<compile_context>
chip_gen: v5e
topology: v5e:2x2
jax: 0.10.0
libtpu: 0.0.40
codegen_flags: <defaults>
</compile_context>

<pallas_src>
import functools

import jax
import jax.numpy as jnp
from jax import lax
from jax.experimental import pallas as pl
from jax.experimental.pallas import tpu as pltpu


# ----------------------------------------------------------------------------
# Kernel A: per-batch transformer block + collapsed lm_head/regressor-layer-1
# ----------------------------------------------------------------------------
def _transformer_block_kernel(
    x_ref,                         # (1, T, H)  embedded tokens for batch b
    ln1_g_ref, ln1_b_ref,          # (1, H)
    w_q_ref, w_k_ref, w_v_ref,     # (NH, H, DH)  bf16
    wo_h_ref,                      # (NH, DH, H)  bf16
    bo_ref,                        # (1, H)
    ln2_g_ref, ln2_b_ref,          # (1, H)
    w_fc_ref, b_fc_ref,            # (H, 4H) bf16, (1, 4H)
    w_pj_ref, b_pj_ref,            # (4H, H) bf16, (1, H)
    lnf_g_ref, lnf_b_ref,          # (1, H)
    w_comb_ref,                    # (H, H1) bf16  == wte.T @ r_w1 (pre-contracted)
    r_b1_ref,                      # (1, H1)
    l1_ref,                        # (1, T, H1)  output
    *, seq, nheads,
):
    f32 = jnp.float32
    bf16 = jnp.bfloat16

    def layernorm(v, g, b):
        mu = jnp.mean(v, axis=-1, keepdims=True)
        var = jnp.mean((v - mu) ** 2, axis=-1, keepdims=True)
        return (v - mu) * lax.rsqrt(var + 1e-5) * g + b

    def gelu_new(v):
        # GPT-Neo uses the tanh ("new") GELU approximation (kept in f32).
        return 0.5 * v * (1.0 + jnp.tanh(
            0.7978845608028654 * (v + 0.044715 * v * v * v)))

    x = x_ref[0]                                                   # (T, H) f32

    # ---- attention sub-block: pre-LN, per-head, causal softmax ----
    h_ln = layernorm(x, ln1_g_ref[...], ln1_b_ref[...])
    h_bf = h_ln.astype(bf16)

    # Plain per-batch causal mask (T, T); no batch-block-diagonal, no int div.
    row = lax.broadcasted_iota(jnp.int32, (seq, seq), 0)
    col = lax.broadcasted_iota(jnp.int32, (seq, seq), 1)
    causal = col <= row

    attn = jnp.zeros_like(x)                                       # (T, H) f32
    for hh in range(nheads):
        q = jnp.dot(h_bf, w_q_ref[hh], preferred_element_type=f32)  # (T, DH)
        k = jnp.dot(h_bf, w_k_ref[hh], preferred_element_type=f32)
        v = jnp.dot(h_bf, w_v_ref[hh], preferred_element_type=f32)
        # GPT-Neo attention does NOT scale scores by 1/sqrt(d_head).
        s = lax.dot_general(q.astype(bf16), k.astype(bf16),
                            (((1,), (1,)), ((), ())),
                            preferred_element_type=f32)             # (T, T)
        s = jnp.where(causal, s, -1e30)
        m = jnp.max(s, axis=-1, keepdims=True)
        p = jnp.exp(s - m)
        p = p * pl.reciprocal(jnp.sum(p, axis=-1, keepdims=True), approx=True)
        ctx = jnp.dot(p.astype(bf16), v.astype(bf16),
                      preferred_element_type=f32)                    # (T, DH)
        # Accumulate this head straight through its output-projection slice:
        # no per-head context concat, no non-aligned lane slicing.
        attn = attn + jnp.dot(ctx.astype(bf16), wo_h_ref[hh],
                              preferred_element_type=f32)

    x = x + attn + bo_ref[...]

    # ---- MLP sub-block (gelu_new) + residual ----
    h_ln = layernorm(x, ln2_g_ref[...], ln2_b_ref[...])
    ff = gelu_new(jnp.dot(h_ln.astype(bf16), w_fc_ref[...],
                          preferred_element_type=f32) + b_fc_ref[...])
    x = x + jnp.dot(ff.astype(bf16), w_pj_ref[...],
                    preferred_element_type=f32) + b_pj_ref[...]

    # ---- final LN + collapsed (tied lm_head o regressor layer-1) ----
    x = layernorm(x, lnf_g_ref[...], lnf_b_ref[...])
    l1 = jnp.dot(x.astype(bf16), w_comb_ref[...],
                 preferred_element_type=f32) + r_b1_ref[...]        # (T, H1)
    l1_ref[0] = l1


# ----------------------------------------------------------------------------
# Kernel B: regressor head (BatchNorm over batch + Linear/ReLU/Linear)
# ----------------------------------------------------------------------------
def _regressor_head_kernel(
    l1_ref,                        # (B, T, H1)
    bn_g_ref, bn_b_ref,            # (T, H1)
    r_w2_ref,                      # (T, H1, H2) bf16
    r_b2_ref,                      # (1, H2)
    r_w3_ref,                      # (H2, OUT) bf16
    r_b3_ref,                      # (1, OUT)
    out_ref,                       # (B, OUT)
    *, seq,
):
    f32 = jnp.float32
    bf16 = jnp.bfloat16

    l1 = l1_ref[...]                                               # (B, T, H1)

    # BatchNorm1d (train-mode biased batch statistics) per flattened (t, h1)
    # feature, computed on the 3-D layout -- the (B, T*H1) flatten never
    # materializes.
    mu = jnp.mean(l1, axis=0, keepdims=True)
    var = jnp.mean((l1 - mu) ** 2, axis=0, keepdims=True)
    a1 = jnp.maximum(
        (l1 - mu) * lax.rsqrt(var + 1e-5) * bn_g_ref[...] + bn_b_ref[...], 0.0)

    # Linear(T*H1 -> H2) as a per-token K-reduction: h2 = sum_t a1_t @ r_w2[t]
    bsz = l1.shape[0]
    acc = jnp.zeros((bsz, r_w2_ref.shape[-1]), f32)
    for t in range(seq):
        acc = acc + jnp.dot(a1[:, t, :].astype(bf16), r_w2_ref[t],
                            preferred_element_type=f32)
    h2 = jnp.maximum(acc + r_b2_ref[...], 0.0)

    out_ref[...] = (jnp.dot(h2.astype(bf16), r_w3_ref[...],
                            preferred_element_type=f32) + r_b3_ref[...])


# ----------------------------------------------------------------------------
# Model wrapper
# ----------------------------------------------------------------------------
# Small-shape config consistent with the module's structure.
V = 32          # vocab ("in_dim" of the regressor; 50257 in the original)
T = 8           # sequence length ("num_tokens"; 1790 in the original)
H = 32          # gpt-neo hidden size
NH = 2          # attention heads
DH = H // NH
H1 = 16         # regressor hidden_dim1 (450 in the original)
H2 = 4          # regressor hidden_dim2 (1 in the original)
OUT = 1
B = 2           # batch


def init_params(key):
    ks = iter(jax.random.split(key, 12))
    bf16 = jnp.bfloat16

    def w(shape, scale=0.02):
        return (scale * jax.random.normal(next(ks), shape)).astype(jnp.float32)

    def zeros(shape):
        return jnp.zeros(shape, jnp.float32)

    def ones(shape):
        return jnp.ones(shape, jnp.float32)

    wte = w((V, H))
    r_w1 = w((V, H1))

    p = {
        # tiny GPT-Neo stand-in (MXU weights stored bf16, biases/LN f32)
        "wte": wte,                        # f32, only used for embedding gather
        "wpe": w((T, H)),
        "ln1_g": ones((1, H)), "ln1_b": zeros((1, H)),
        "w_q": w((NH, H, DH)).astype(bf16),
        "w_k": w((NH, H, DH)).astype(bf16),
        "w_v": w((NH, H, DH)).astype(bf16),
        "wo_h": w((NH, DH, H)).astype(bf16),
        "bo": zeros((1, H)),
        "ln2_g": ones((1, H)), "ln2_b": zeros((1, H)),
        "w_fc": w((H, 4 * H)).astype(bf16), "b_fc": zeros((1, 4 * H)),
        "w_pj": w((4 * H, H)).astype(bf16), "b_pj": zeros((1, H)),
        "lnf_g": ones((1, H)), "lnf_b": zeros((1, H)),
        # regressor MLP
        "r_b1": zeros((1, H1)),
        "bn_g": ones((T, H1)), "bn_b": zeros((T, H1)),
        "r_w2": w((T, H1, H2)).astype(bf16), "r_b2": zeros((1, H2)),
        "r_w3": w((H2, OUT)).astype(bf16), "r_b3": zeros((1, OUT)),
    }
    # Tied lm_head pre-contracted with regressor layer-1, ONCE at init:
    #   (x @ wte.T) @ r_w1 + r_b1  ==  x @ (wte.T @ r_w1) + r_b1
    p["w_comb"] = (wte.T @ r_w1).astype(bf16)                        # (H, H1)
    return p


def custom_gptneo_forward(ids, p):
    Bz, Tz = ids.shape

    # --- embeddings (gather glue; the heavy math runs in the Pallas calls) --
    x = (jnp.take(p["wte"], ids, axis=0)
         + p["wpe"][None, :Tz, :]).astype(jnp.float32)               # (B, T, H)

    def rep(shape):
        # whole-array block, identical for every grid step
        if len(shape) == 2:
            return pl.BlockSpec(shape, lambda b: (0, 0))
        return pl.BlockSpec(shape, lambda b: (0, 0, 0))

    block_kernel = functools.partial(
        _transformer_block_kernel, seq=Tz, nheads=NH)

    l1 = pl.pallas_call(
        block_kernel,
        out_shape=jax.ShapeDtypeStruct((Bz, Tz, H1), jnp.float32),
        grid=(Bz,),
        in_specs=[
            pl.BlockSpec((1, Tz, H), lambda b: (b, 0, 0)),
            rep((1, H)), rep((1, H)),
            rep((NH, H, DH)), rep((NH, H, DH)), rep((NH, H, DH)),
            rep((NH, DH, H)),
            rep((1, H)),
            rep((1, H)), rep((1, H)),
            rep((H, 4 * H)), rep((1, 4 * H)),
            rep((4 * H, H)), rep((1, H)),
            rep((1, H)), rep((1, H)),
            rep((H, H1)), rep((1, H1)),
        ],
        out_specs=pl.BlockSpec((1, Tz, H1), lambda b: (b, 0, 0)),
        compiler_params=pltpu.CompilerParams(
            dimension_semantics=("parallel",)),
    )(
        x,
        p["ln1_g"], p["ln1_b"],
        p["w_q"], p["w_k"], p["w_v"],
        p["wo_h"], p["bo"],
        p["ln2_g"], p["ln2_b"],
        p["w_fc"], p["b_fc"],
        p["w_pj"], p["b_pj"],
        p["lnf_g"], p["lnf_b"],
        p["w_comb"], p["r_b1"],
    )

    # BatchNorm needs cross-batch statistics -> tiny gridless second call.
    head_kernel = functools.partial(_regressor_head_kernel, seq=Tz)
    out = pl.pallas_call(
        head_kernel,
        out_shape=jax.ShapeDtypeStruct((Bz, OUT), jnp.float32),
    )(l1, p["bn_g"], p["bn_b"], p["r_w2"], p["r_b2"], p["r_w3"], p["r_b3"])
    return out


if __name__ == "__main__":
    key = jax.random.PRNGKey(0)
    pkey, ikey = jax.random.split(key)
    params = init_params(pkey)
    ids = jax.random.randint(ikey, (B, T), 0, V, dtype=jnp.int32)

    out = jax.jit(custom_gptneo_forward)(ids, params)
    out = jax.block_until_ready(out)
    assert out.shape == (B, 1), out.shape
    assert bool(jnp.all(jnp.isfinite(out)))
    print("KERNEL_OK")
</pallas_src>

<mosaic_0001>
module attributes {stable_mosaic.version = 11 : i64} {
  func.func @_regressor_head_kernel(%arg0: memref<2x8x16xf32, #tpu.memory_space<vmem>>, %arg1: memref<8x16xf32, #tpu.memory_space<vmem>>, %arg2: memref<8x16xf32, #tpu.memory_space<vmem>>, %arg3: memref<8x16x4xbf16, #tpu.memory_space<vmem>>, %arg4: memref<1x4xf32, #tpu.memory_space<vmem>>, %arg5: memref<4x1xbf16, #tpu.memory_space<vmem>>, %arg6: memref<1x1xf32, #tpu.memory_space<vmem>>, %arg7: memref<2x1xf32, #tpu.memory_space<vmem>>) attributes {dimension_semantics = [], scalar_prefetch = 0 : i64, scratch_operands = 0 : i64, tpu.core_type = #tpu.core_type<tc>} {
    %c0 = arith.constant 0 : index
    %c0_0 = arith.constant 0 : index
    %c0_1 = arith.constant 0 : index
    %0 = vector.load %arg0[%c0, %c0_0, %c0_1] : memref<2x8x16xf32, #tpu.memory_space<vmem>>, vector<2x8x16xf32>
    %cst = arith.constant dense<0.000000e+00> : vector<8x16xf32>
    %1 = vector.multi_reduction <add>, %0, %cst [0] : vector<2x8x16xf32> to vector<8x16xf32>
    %2 = vector.shape_cast %1 : vector<8x16xf32> to vector<1x8x16xf32>
    %cst_2 = arith.constant 2.000000e+00 : f32
    %3 = vector.broadcast %cst_2 : f32 to vector<1x8x16xf32>
    %4 = arith.divf %2, %3 : vector<1x8x16xf32>
    %5 = vector.broadcast %4 : vector<1x8x16xf32> to vector<2x8x16xf32>
    %6 = arith.subf %0, %5 : vector<2x8x16xf32>
    %7 = arith.mulf %6, %6 : vector<2x8x16xf32>
    %cst_3 = arith.constant dense<0.000000e+00> : vector<8x16xf32>
    %8 = vector.multi_reduction <add>, %7, %cst_3 [0] : vector<2x8x16xf32> to vector<8x16xf32>
    %9 = vector.shape_cast %8 : vector<8x16xf32> to vector<1x8x16xf32>
    %cst_4 = arith.constant 2.000000e+00 : f32
    %10 = vector.broadcast %cst_4 : f32 to vector<1x8x16xf32>
    %11 = arith.divf %9, %10 : vector<1x8x16xf32>
    %12 = vector.broadcast %4 : vector<1x8x16xf32> to vector<2x8x16xf32>
    %13 = arith.subf %0, %12 : vector<2x8x16xf32>
    %cst_5 = arith.constant 9.99999974E-6 : f32
    %14 = vector.broadcast %cst_5 : f32 to vector<1x8x16xf32>
    %15 = arith.addf %11, %14 : vector<1x8x16xf32>
    %16 = math.rsqrt %15 : vector<1x8x16xf32>
    %17 = vector.broadcast %16 : vector<1x8x16xf32> to vector<2x8x16xf32>
    %18 = arith.mulf %13, %17 : vector<2x8x16xf32>
    %c0_6 = arith.constant 0 : index
    %c0_7 = arith.constant 0 : index
    %19 = vector.load %arg1[%c0_6, %c0_7] : memref<8x16xf32, #tpu.memory_space<vmem>>, vector<8x16xf32>
    %20 = vector.shape_cast %19 : vector<8x16xf32> to vector<1x8x16xf32>
    %21 = vector.broadcast %20 : vector<1x8x16xf32> to vector<2x8x16xf32>
    %22 = arith.mulf %18, %21 : vector<2x8x16xf32>
    %c0_8 = arith.constant 0 : index
    %c0_9 = arith.constant 0 : index
    %23 = vector.load %arg2[%c0_8, %c0_9] : memref<8x16xf32, #tpu.memory_space<vmem>>, vector<8x16xf32>
    %24 = vector.shape_cast %23 : vector<8x16xf32> to vector<1x8x16xf32>
    %25 = vector.broadcast %24 : vector<1x8x16xf32> to vector<2x8x16xf32>
    %26 = arith.addf %22, %25 : vector<2x8x16xf32>
    %cst_10 = arith.constant 0.000000e+00 : f32
    %27 = vector.broadcast %cst_10 : f32 to vector<2x8x16xf32>
    %28 = arith.maximumf %26, %27 : vector<2x8x16xf32>
    %cst_11 = arith.constant 0.000000e+00 : f32
    %29 = vector.broadcast %cst_11 : f32 to vector<2x4xf32>
    %30 = vector.extract_strided_slice %28 {offsets = [0, 0, 0], sizes = [2, 1, 16], strides = [1, 1, 1]} : vector<2x8x16xf32> to vector<2x1x16xf32>
    %31 = vector.shape_cast %30 : vector<2x1x16xf32> to vector<2x16xf32>
    %32 = arith.truncf %31 : vector<2x16xf32> to vector<2x16xbf16>
    %c0_12 = arith.constant 0 : index
    %c0_13 = arith.constant 0 : index
    %c0_14 = arith.constant 0 : index
    %33 = vector.load %arg3[%c0_12, %c0_13, %c0_14] : memref<8x16x4xbf16, #tpu.memory_space<vmem>>, vector<1x16x4xbf16>
    %34 = vector.shape_cast %33 : vector<1x16x4xbf16> to vector<16x4xbf16>
    %cst_15 = arith.constant dense<0.000000e+00> : vector<2x4xf32>
    %35 = tpu.matmul %32, %34, %cst_15 {dimension_numbers = #tpu.dot_dimension_numbers<[1], [0], [0], [1], [0, 0, 1, 1], [], []>} : vector<2x16xbf16>, vector<16x4xbf16>, vector<2x4xf32> -> vector<2x4xf32>
    %36 = arith.addf %29, %35 : vector<2x4xf32>
    %37 = vector.extract_strided_slice %28 {offsets = [0, 1, 0], sizes = [2, 1, 16], strides = [1, 1, 1]} : vector<2x8x16xf32> to vector<2x1x16xf32>
    %38 = vector.shape_cast %37 : vector<2x1x16xf32> to vector<2x16xf32>
    %39 = arith.truncf %38 : vector<2x16xf32> to vector<2x16xbf16>
    %c1 = arith.constant 1 : index
    %c0_16 = arith.constant 0 : index
    %c0_17 = arith.constant 0 : index
    %40 = vector.load %arg3[%c1, %c0_16, %c0_17] : memref<8x16x4xbf16, #tpu.memory_space<vmem>>, vector<1x16x4xbf16>
    %41 = vector.shape_cast %40 : vector<1x16x4xbf16> to vector<16x4xbf16>
    %cst_18 = arith.constant dense<0.000000e+00> : vector<2x4xf32>
    %42 = tpu.matmul %39, %41, %cst_18 {dimension_numbers = #tpu.dot_dimension_numbers<[1], [0], [0], [1], [0, 0, 1, 1], [], []>} : vector<2x16xbf16>, vector<16x4xbf16>, vector<2x4xf32> -> vector<2x4xf32>
    %43 = arith.addf %36, %42 : vector<2x4xf32>
    %44 = vector.extract_strided_slice %28 {offsets = [0, 2, 0], sizes = [2, 1, 16], strides = [1, 1, 1]} : vector<2x8x16xf32> to vector<2x1x16xf32>
    %45 = vector.shape_cast %44 : vector<2x1x16xf32> to vector<2x16xf32>
    %46 = arith.truncf %45 : vector<2x16xf32> to vector<2x16xbf16>
    %c2 = arith.constant 2 : index
    %c0_19 = arith.constant 0 : index
    %c0_20 = arith.constant 0 : index
    %47 = vector.load %arg3[%c2, %c0_19, %c0_20] : memref<8x16x4xbf16, #tpu.memory_space<vmem>>, vector<1x16x4xbf16>
    %48 = vector.shape_cast %47 : vector<1x16x4xbf16> to vector<16x4xbf16>
    %cst_21 = arith.constant dense<0.000000e+00> : vector<2x4xf32>
    %49 = tpu.matmul %46, %48, %cst_21 {dimension_numbers = #tpu.dot_dimension_numbers<[1], [0], [0], [1], [0, 0, 1, 1], [], []>} : vector<2x16xbf16>, vector<16x4xbf16>, vector<2x4xf32> -> vector<2x4xf32>
    %50 = arith.addf %43, %49 : vector<2x4xf32>
    %51 = vector.extract_strided_slice %28 {offsets = [0, 3, 0], sizes = [2, 1, 16], strides = [1, 1, 1]} : vector<2x8x16xf32> to vector<2x1x16xf32>
    %52 = vector.shape_cast %51 : vector<2x1x16xf32> to vector<2x16xf32>
    %53 = arith.truncf %52 : vector<2x16xf32> to vector<2x16xbf16>
    %c3 = arith.constant 3 : index
    %c0_22 = arith.constant 0 : index
    %c0_23 = arith.constant 0 : index
    %54 = vector.load %arg3[%c3, %c0_22, %c0_23] : memref<8x16x4xbf16, #tpu.memory_space<vmem>>, vector<1x16x4xbf16>
    %55 = vector.shape_cast %54 : vector<1x16x4xbf16> to vector<16x4xbf16>
    %cst_24 = arith.constant dense<0.000000e+00> : vector<2x4xf32>
    %56 = tpu.matmul %53, %55, %cst_24 {dimension_numbers = #tpu.dot_dimension_numbers<[1], [0], [0], [1], [0, 0, 1, 1], [], []>} : vector<2x16xbf16>, vector<16x4xbf16>, vector<2x4xf32> -> vector<2x4xf32>
    %57 = arith.addf %50, %56 : vector<2x4xf32>
    %58 = vector.extract_strided_slice %28 {offsets = [0, 4, 0], sizes = [2, 1, 16], strides = [1, 1, 1]} : vector<2x8x16xf32> to vector<2x1x16xf32>
    %59 = vector.shape_cast %58 : vector<2x1x16xf32> to vector<2x16xf32>
    %60 = arith.truncf %59 : vector<2x16xf32> to vector<2x16xbf16>
    %c4 = arith.constant 4 : index
    %c0_25 = arith.constant 0 : index
    %c0_26 = arith.constant 0 : index
    %61 = vector.load %arg3[%c4, %c0_25, %c0_26] : memref<8x16x4xbf16, #tpu.memory_space<vmem>>, vector<1x16x4xbf16>
    %62 = vector.shape_cast %61 : vector<1x16x4xbf16> to vector<16x4xbf16>
    %cst_27 = arith.constant dense<0.000000e+00> : vector<2x4xf32>
    %63 = tpu.matmul %60, %62, %cst_27 {dimension_numbers = #tpu.dot_dimension_numbers<[1], [0], [0], [1], [0, 0, 1, 1], [], []>} : vector<2x16xbf16>, vector<16x4xbf16>, vector<2x4xf32> -> vector<2x4xf32>
    %64 = arith.addf %57, %63 : vector<2x4xf32>
    %65 = vector.extract_strided_slice %28 {offsets = [0, 5, 0], sizes = [2, 1, 16], strides = [1, 1, 1]} : vector<2x8x16xf32> to vector<2x1x16xf32>
    %66 = vector.shape_cast %65 : vector<2x1x16xf32> to vector<2x16xf32>
    %67 = arith.truncf %66 : vector<2x16xf32> to vector<2x16xbf16>
    %c5 = arith.constant 5 : index
    %c0_28 = arith.constant 0 : index
    %c0_29 = arith.constant 0 : index
    %68 = vector.load %arg3[%c5, %c0_28, %c0_29] : memref<8x16x4xbf16, #tpu.memory_space<vmem>>, vector<1x16x4xbf16>
    %69 = vector.shape_cast %68 : vector<1x16x4xbf16> to vector<16x4xbf16>
    %cst_30 = arith.constant dense<0.000000e+00> : vector<2x4xf32>
    %70 = tpu.matmul %67, %69, %cst_30 {dimension_numbers = #tpu.dot_dimension_numbers<[1], [0], [0], [1], [0, 0, 1, 1], [], []>} : vector<2x16xbf16>, vector<16x4xbf16>, vector<2x4xf32> -> vector<2x4xf32>
    %71 = arith.addf %64, %70 : vector<2x4xf32>
    %72 = vector.extract_strided_slice %28 {offsets = [0, 6, 0], sizes = [2, 1, 16], strides = [1, 1, 1]} : vector<2x8x16xf32> to vector<2x1x16xf32>
    %73 = vector.shape_cast %72 : vector<2x1x16xf32> to vector<2x16xf32>
    %74 = arith.truncf %73 : vector<2x16xf32> to vector<2x16xbf16>
    %c6 = arith.constant 6 : index
    %c0_31 = arith.constant 0 : index
    %c0_32 = arith.constant 0 : index
    %75 = vector.load %arg3[%c6, %c0_31, %c0_32] : memref<8x16x4xbf16, #tpu.memory_space<vmem>>, vector<1x16x4xbf16>
    %76 = vector.shape_cast %75 : vector<1x16x4xbf16> to vector<16x4xbf16>
    %cst_33 = arith.constant dense<0.000000e+00> : vector<2x4xf32>
    %77 = tpu.matmul %74, %76, %cst_33 {dimension_numbers = #tpu.dot_dimension_numbers<[1], [0], [0], [1], [0, 0, 1, 1], [], []>} : vector<2x16xbf16>, vector<16x4xbf16>, vector<2x4xf32> -> vector<2x4xf32>
    %78 = arith.addf %71, %77 : vector<2x4xf32>
    %79 = vector.extract_strided_slice %28 {offsets = [0, 7, 0], sizes = [2, 1, 16], strides = [1, 1, 1]} : vector<2x8x16xf32> to vector<2x1x16xf32>
    %80 = vector.shape_cast %79 : vector<2x1x16xf32> to vector<2x16xf32>
    %81 = arith.truncf %80 : vector<2x16xf32> to vector<2x16xbf16>
    %c7 = arith.constant 7 : index
    %c0_34 = arith.constant 0 : index
    %c0_35 = arith.constant 0 : index
    %82 = vector.load %arg3[%c7, %c0_34, %c0_35] : memref<8x16x4xbf16, #tpu.memory_space<vmem>>, vector<1x16x4xbf16>
    %83 = vector.shape_cast %82 : vector<1x16x4xbf16> to vector<16x4xbf16>
    %cst_36 = arith.constant dense<0.000000e+00> : vector<2x4xf32>
    %84 = tpu.matmul %81, %83, %cst_36 {dimension_numbers = #tpu.dot_dimension_numbers<[1], [0], [0], [1], [0, 0, 1, 1], [], []>} : vector<2x16xbf16>, vector<16x4xbf16>, vector<2x4xf32> -> vector<2x4xf32>
    %85 = arith.addf %78, %84 : vector<2x4xf32>
    %c0_37 = arith.constant 0 : index
    %c0_38 = arith.constant 0 : index
    %86 = vector.load %arg4[%c0_37, %c0_38] : memref<1x4xf32, #tpu.memory_space<vmem>>, vector<1x4xf32>
    %87 = vector.broadcast %86 : vector<1x4xf32> to vector<2x4xf32>
    %88 = arith.addf %85, %87 : vector<2x4xf32>
    %cst_39 = arith.constant 0.000000e+00 : f32
    %89 = vector.broadcast %cst_39 : f32 to vector<2x4xf32>
    %90 = arith.maximumf %88, %89 : vector<2x4xf32>
    %91 = arith.truncf %90 : vector<2x4xf32> to vector<2x4xbf16>
    %c0_40 = arith.constant 0 : index
    %c0_41 = arith.constant 0 : index
    %92 = vector.load %arg5[%c0_40, %c0_41] : memref<4x1xbf16, #tpu.memory_space<vmem>>, vector<4x1xbf16>
    %cst_42 = arith.constant dense<0.000000e+00> : vector<2x1xf32>
    %93 = tpu.matmul %91, %92, %cst_42 {dimension_numbers = #tpu.dot_dimension_numbers<[1], [0], [0], [1], [0, 0, 1, 1], [], []>} : vector<2x4xbf16>, vector<4x1xbf16>, vector<2x1xf32> -> vector<2x1xf32>
    %c0_43 = arith.constant 0 : index
    %c0_44 = arith.constant 0 : index
    %94 = vector.load %arg6[%c0_43, %c0_44] : memref<1x1xf32, #tpu.memory_space<vmem>>, vector<1x1xf32>
    %95 = vector.broadcast %94 : vector<1x1xf32> to vector<2x1xf32>
    %96 = arith.addf %93, %95 : vector<2x1xf32>
    %c0_45 = arith.constant 0 : index
    %c0_46 = arith.constant 0 : index
    %97 = vector.load %arg7[%c0_45, %c0_46] : memref<2x1xf32, #tpu.memory_space<vmem>>, vector<2x1xf32>
    tpu.vector_store %arg7[%c0_45, %c0_46], %96 {strides = array<i32>} : memref<2x1xf32, #tpu.memory_space<vmem>>, vector<2x1xf32>,
    return
  }
}

module attributes {stable_mosaic.version = 11 : i64} {
  func.func @_transformer_block_kernel(%arg0: i32, %arg1: memref<1x8x32xf32, #tpu.memory_space<vmem>>, %arg2: memref<1x32xf32, #tpu.memory_space<vmem>>, %arg3: memref<1x32xf32, #tpu.memory_space<vmem>>, %arg4: memref<2x32x16xbf16, #tpu.memory_space<vmem>>, %arg5: memref<2x32x16xbf16, #tpu.memory_space<vmem>>, %arg6: memref<2x32x16xbf16, #tpu.memory_space<vmem>>, %arg7: memref<2x16x32xbf16, #tpu.memory_space<vmem>>, %arg8: memref<1x32xf32, #tpu.memory_space<vmem>>, %arg9: memref<1x32xf32, #tpu.memory_space<vmem>>, %arg10: memref<1x32xf32, #tpu.memory_space<vmem>>, %arg11: memref<32x128xbf16, #tpu.memory_space<vmem>>, %arg12: memref<1x128xf32, #tpu.memory_space<vmem>>, %arg13: memref<128x32xbf16, #tpu.memory_space<vmem>>, %arg14: memref<1x32xf32, #tpu.memory_space<vmem>>, %arg15: memref<1x32xf32, #tpu.memory_space<vmem>>, %arg16: memref<1x32xf32, #tpu.memory_space<vmem>>, %arg17: memref<32x16xbf16, #tpu.memory_space<vmem>>, %arg18: memref<1x16xf32, #tpu.memory_space<vmem>>, %arg19: memref<1x8x16xf32, #tpu.memory_space<vmem>>) attributes {dimension_semantics = [#tpu.dimension_semantics<parallel>], iteration_bounds = array<i64: 2>, scalar_prefetch = 0 : i64, scratch_operands = 0 : i64, tpu.core_type = #tpu.core_type<tc>, window_params = [{transform_indices = @transform_0, window_bounds = array<i64: 1, 8, 32>}, {pipeline_mode = #tpu.pipeline_mode<synchronous>, transform_indices = @transform_1, window_bounds = array<i64: 1, 32>}, {pipeline_mode = #tpu.pipeline_mode<synchronous>, transform_indices = @transform_2, window_bounds = array<i64: 1, 32>}, {pipeline_mode = #tpu.pipeline_mode<synchronous>, transform_indices = @transform_3, window_bounds = array<i64: 2, 32, 16>}, {pipeline_mode = #tpu.pipeline_mode<synchronous>, transform_indices = @transform_4, window_bounds = array<i64: 2, 32, 16>}, {pipeline_mode = #tpu.pipeline_mode<synchronous>, transform_indices = @transform_5, window_bounds = array<i64: 2, 32, 16>}, {pipeline_mode = #tpu.pipeline_mode<synchronous>, transform_indices = @transform_6, window_bounds = array<i64: 2, 16, 32>}, {pipeline_mode = #tpu.pipeline_mode<synchronous>, transform_indices = @transform_7, window_bounds = array<i64: 1, 32>}, {pipeline_mode = #tpu.pipeline_mode<synchronous>, transform_indices = @transform_8, window_bounds = array<i64: 1, 32>}, {pipeline_mode = #tpu.pipeline_mode<synchronous>, transform_indices = @transform_9, window_bounds = array<i64: 1, 32>}, {pipeline_mode = #tpu.pipeline_mode<synchronous>, transform_indices = @transform_10, window_bounds = array<i64: 32, 128>}, {pipeline_mode = #tpu.pipeline_mode<synchronous>, transform_indices = @transform_11, window_bounds = array<i64: 1, 128>}, {pipeline_mode = #tpu.pipeline_mode<synchronous>, transform_indices = @transform_12, window_bounds = array<i64: 128, 32>}, {pipeline_mode = #tpu.pipeline_mode<synchronous>, transform_indices = @transform_13, window_bounds = array<i64: 1, 32>}, {pipeline_mode = #tpu.pipeline_mode<synchronous>, transform_indices = @transform_14, window_bounds = array<i64: 1, 32>}, {pipeline_mode = #tpu.pipeline_mode<synchronous>, transform_indices = @transform_15, window_bounds = array<i64: 1, 32>}, {pipeline_mode = #tpu.pipeline_mode<synchronous>, transform_indices = @transform_16, window_bounds = array<i64: 32, 16>}, {pipeline_mode = #tpu.pipeline_mode<synchronous>, transform_indices = @transform_17, window_bounds = array<i64: 1, 16>}, {transform_indices = @transform_18, window_bounds = array<i64: 1, 8, 16>}]} {
    %c0 = arith.constant 0 : index
    %c0_0 = arith.constant 0 : index
    %c0_1 = arith.constant 0 : index
    %0 = vector.load %arg1[%c0, %c0_0, %c0_1] : memref<1x8x32xf32, #tpu.memory_space<vmem>>, vector<1x8x32xf32>
    %1 = vector.shape_cast %0 : vector<1x8x32xf32> to vector<8x32xf32>
    %c0_2 = arith.constant 0 : index
    %c0_3 = arith.constant 0 : index
    %2 = vector.load %arg2[%c0_2, %c0_3] : memref<1x32xf32, #tpu.memory_space<vmem>>, vector<1x32xf32>
    %c0_4 = arith.constant 0 : index
    %c0_5 = arith.constant 0 : index
    %3 = vector.load %arg3[%c0_4, %c0_5] : memref<1x32xf32, #tpu.memory_space<vmem>>, vector<1x32xf32>
    %cst = arith.constant dense<0.000000e+00> : vector<8xf32>
    %4 = vector.multi_reduction <add>, %1, %cst [1] : vector<8x32xf32> to vector<8xf32>
    %5 = vector.shape_cast %4 : vector<8xf32> to vector<8x1xf32>
    %cst_6 = arith.constant 3.200000e+01 : f32
    %6 = vector.broadcast %cst_6 : f32 to vector<8x1xf32>
    %7 = arith.divf %5, %6 : vector<8x1xf32>
    %8 = vector.broadcast %7 : vector<8x1xf32> to vector<8x32xf32>
    %9 = arith.subf %1, %8 : vector<8x32xf32>
    %10 = arith.mulf %9, %9 : vector<8x32xf32>
    %cst_7 = arith.constant dense<0.000000e+00> : vector<8xf32>
    %11 = vector.multi_reduction <add>, %10, %cst_7 [1] : vector<8x32xf32> to vector<8xf32>
    %12 = vector.shape_cast %11 : vector<8xf32> to vector<8x1xf32>
    %cst_8 = arith.constant 3.200000e+01 : f32
    %13 = vector.broadcast %cst_8 : f32 to vector<8x1xf32>
    %14 = arith.divf %12, %13 : vector<8x1xf32>
    %15 = vector.broadcast %7 : vector<8x1xf32> to vector<8x32xf32>
    %16 = arith.subf %1, %15 : vector<8x32xf32>
    %cst_9 = arith.constant 9.99999974E-6 : f32
    %17 = vector.broadcast %cst_9 : f32 to vector<8x1xf32>
    %18 = arith.addf %14, %17 : vector<8x1xf32>
    %19 = math.rsqrt %18 : vector<8x1xf32>
    %20 = vector.broadcast %19 : vector<8x1xf32> to vector<8x32xf32>
    %21 = arith.mulf %16, %20 : vector<8x32xf32>
    %22 = vector.broadcast %2 : vector<1x32xf32> to vector<8x32xf32>
    %23 = arith.mulf %21, %22 : vector<8x32xf32>
    %24 = vector.broadcast %3 : vector<1x32xf32> to vector<8x32xf32>
    %25 = arith.addf %23, %24 : vector<8x32xf32>
    %26 = arith.truncf %25 : vector<8x32xf32> to vector<8x32xbf16>
    %27 = tpu.iota {dimensions = array<i32: 0>} : vector<8x8xi32>
    %28 = tpu.iota {dimensions = array<i32: 1>} : vector<8x8xi32>
    %29 = arith.cmpi sle, %28, %27 : vector<8x8xi32>
    %cst_10 = arith.constant 0.000000e+00 : f32
    %30 = vector.broadcast %cst_10 : f32 to vector<8x32xf32>
    %c0_11 = arith.constant 0 : index
    %c0_12 = arith.constant 0 : index
    %c0_13 = arith.constant 0 : index
    %31 = vector.load %arg4[%c0_11, %c0_12, %c0_13] : memref<2x32x16xbf16, #tpu.memory_space<vmem>>, vector<1x32x16xbf16>
    %32 = vector.shape_cast %31 : vector<1x32x16xbf16> to vector<32x16xbf16>
    %cst_14 = arith.constant dense<0.000000e+00> : vector<8x16xf32>
    %33 = tpu.matmul %26, %32, %cst_14 {dimension_numbers = #tpu.dot_dimension_numbers<[1], [0], [0], [1], [0, 0, 1, 1], [], []>} : vector<8x32xbf16>, vector<32x16xbf16>, vector<8x16xf32> -> vector<8x16xf32>
    %c0_15 = arith.constant 0 : index
    %c0_16 = arith.constant 0 : index
    %c0_17 = arith.constant 0 : index
    %34 = vector.load %arg5[%c0_15, %c0_16, %c0_17] : memref<2x32x16xbf16, #tpu.memory_space<vmem>>, vector<1x32x16xbf16>
    %35 = vector.shape_cast %34 : vector<1x32x16xbf16> to vector<32x16xbf16>
    %cst_18 = arith.constant dense<0.000000e+00> : vector<8x16xf32>
    %36 = tpu.matmul %26, %35, %cst_18 {dimension_numbers = #tpu.dot_dimension_numbers<[1], [0], [0], [1], [0, 0, 1, 1], [], []>} : vector<8x32xbf16>, vector<32x16xbf16>, vector<8x16xf32> -> vector<8x16xf32>
    %c0_19 = arith.constant 0 : index
    %c0_20 = arith.constant 0 : index
    %c0_21 = arith.constant 0 : index
    %37 = vector.load %arg6[%c0_19, %c0_20, %c0_21] : memref<2x32x16xbf16, #tpu.memory_space<vmem>>, vector<1x32x16xbf16>
    %38 = vector.shape_cast %37 : vector<1x32x16xbf16> to vector<32x16xbf16>
    %cst_22 = arith.constant dense<0.000000e+00> : vector<8x16xf32>
    %39 = tpu.matmul %26, %38, %cst_22 {dimension_numbers = #tpu.dot_dimension_numbers<[1], [0], [0], [1], [0, 0, 1, 1], [], []>} : vector<8x32xbf16>, vector<32x16xbf16>, vector<8x16xf32> -> vector<8x16xf32>
    %40 = arith.truncf %33 : vector<8x16xf32> to vector<8x16xbf16>
    %41 = arith.truncf %36 : vector<8x16xf32> to vector<8x16xbf16>
    %cst_23 = arith.constant dense<0.000000e+00> : vector<8x8xf32>
    %42 = tpu.matmul %40, %41, %cst_23 {dimension_numbers = #tpu.dot_dimension_numbers<[1], [1], [0], [0], [0, 0, 1, 0], [], []>} : vector<8x16xbf16>, vector<8x16xbf16>, vector<8x8xf32> -> vector<8x8xf32>
    %cst_24 = arith.constant -1.000000e+30 : f32
    %43 = vector.broadcast %cst_24 : f32 to vector<8x8xf32>
    %44 = arith.select %29, %42, %43 : vector<8x8xi1>, vector<8x8xf32>
    %cst_25 = arith.constant dense<0xFF800000> : vector<8xf32>
    %45 = vector.multi_reduction <maximumf>, %44, %cst_25 [1] : vector<8x8xf32> to vector<8xf32>
    %46 = vector.shape_cast %45 : vector<8xf32> to vector<8x1xf32>
    %47 = vector.broadcast %46 : vector<8x1xf32> to vector<8x8xf32>
    %48 = arith.subf %44, %47 : vector<8x8xf32>
    %49 = math.exp %48 : vector<8x8xf32>
    %cst_26 = arith.constant dense<0.000000e+00> : vector<8xf32>
    %50 = vector.multi_reduction <add>, %49, %cst_26 [1] : vector<8x8xf32> to vector<8xf32>
    %51 = vector.shape_cast %50 : vector<8xf32> to vector<8x1xf32>
    %52 = tpu.reciprocal %51 {approx = true} : vector<8x1xf32> -> vector<8x1xf32>
    %53 = vector.broadcast %52 : vector<8x1xf32> to vector<8x8xf32>
    %54 = arith.mulf %49, %53 : vector<8x8xf32>
    %55 = arith.truncf %54 : vector<8x8xf32> to vector<8x8xbf16>
    %56 = arith.truncf %39 : vector<8x16xf32> to vector<8x16xbf16>
    %cst_27 = arith.constant dense<0.000000e+00> : vector<8x16xf32>
    %57 = tpu.matmul %55, %56, %cst_27 {dimension_numbers = #tpu.dot_dimension_numbers<[1], [0], [0], [1], [0, 0, 1, 1], [], []>} : vector<8x8xbf16>, vector<8x16xbf16>, vector<8x16xf32> -> vector<8x16xf32>
    %58 = arith.truncf %57 : vector<8x16xf32> to vector<8x16xbf16>
    %c0_28 = arith.constant 0 : index
    %c0_29 = arith.constant 0 : index
    %c0_30 = arith.constant 0 : index
    %59 = vector.load %arg7[%c0_28, %c0_29, %c0_30] : memref<2x16x32xbf16, #tpu.memory_space<vmem>>, vector<1x16x32xbf16>
    %60 = vector.shape_cast %59 : vector<1x16x32xbf16> to vector<16x32xbf16>
    %cst_31 = arith.constant dense<0.000000e+00> : vector<8x32xf32>
    %61 = tpu.matmul %58, %60, %cst_31 {dimension_numbers = #tpu.dot_dimension_numbers<[1], [0], [0], [1], [0, 0, 1, 1], [], []>} : vector<8x16xbf16>, vector<16x32xbf16>, vector<8x32xf32> -> vector<8x32xf32>
    %62 = arith.addf %30, %61 : vector<8x32xf32>
    %c1 = arith.constant 1 : index
    %c0_32 = arith.constant 0 : index
    %c0_33 = arith.constant 0 : index
    %63 = vector.load %arg4[%c1, %c0_32, %c0_33] : memref<2x32x16xbf16, #tpu.memory_space<vmem>>, vector<1x32x16xbf16>
    %64 = vector.shape_cast %63 : vector<1x32x16xbf16> to vector<32x16xbf16>
    %cst_34 = arith.constant dense<0.000000e+00> : vector<8x16xf32>
    %65 = tpu.matmul %26, %64, %cst_34 {dimension_numbers = #tpu.dot_dimension_numbers<[1], [0], [0], [1], [0, 0, 1, 1], [], []>} : vector<8x32xbf16>, vector<32x16xbf16>, vector<8x16xf32> -> vector<8x16xf32>
    %c1_35 = arith.constant 1 : index
    %c0_36 = arith.constant 0 : index
    %c0_37 = arith.constant 0 : index
    %66 = vector.load %arg5[%c1_35, %c0_36, %c0_37] : memref<2x32x16xbf16, #tpu.memory_space<vmem>>, vector<1x32x16xbf16>
    %67 = vector.shape_cast %66 : vector<1x32x16xbf16> to vector<32x16xbf16>
    %cst_38 = arith.constant dense<0.000000e+00> : vector<8x16xf32>
    %68 = tpu.matmul %26, %67, %cst_38 {dimension_numbers = #tpu.dot_dimension_numbers<[1], [0], [0], [1], [0, 0, 1, 1], [], []>} : vector<8x32xbf16>, vector<32x16xbf16>, vector<8x16xf32> -> vector<8x16xf32>
    %c1_39 = arith.constant 1 : index
    %c0_40 = arith.constant 0 : index
    %c0_41 = arith.constant 0 : index
    %69 = vector.load %arg6[%c1_39, %c0_40, %c0_41] : memref<2x32x16xbf16, #tpu.memory_space<vmem>>, vector<1x32x16xbf16>
    %70 = vector.shape_cast %69 : vector<1x32x16xbf16> to vector<32x16xbf16>
    %cst_42 = arith.constant dense<0.000000e+00> : vector<8x16xf32>
    %71 = tpu.matmul %26, %70, %cst_42 {dimension_numbers = #tpu.dot_dimension_numbers<[1], [0], [0], [1], [0, 0, 1, 1], [], []>} : vector<8x32xbf16>, vector<32x16xbf16>, vector<8x16xf32> -> vector<8x16xf32>
    %72 = arith.truncf %65 : vector<8x16xf32> to vector<8x16xbf16>
    %73 = arith.truncf %68 : vector<8x16xf32> to vector<8x16xbf16>
    %cst_43 = arith.constant dense<0.000000e+00> : vector<8x8xf32>
    %74 = tpu.matmul %72, %73, %cst_43 {dimension_numbers = #tpu.dot_dimension_numbers<[1], [1], [0], [0], [0, 0, 1, 0], [], []>} : vector<8x16xbf16>, vector<8x16xbf16>, vector<8x8xf32> -> vector<8x8xf32>
    %cst_44 = arith.constant -1.000000e+30 : f32
    %75 = vector.broadcast %cst_44 : f32 to vector<8x8xf32>
    %76 = arith.select %29, %74, %75 : vector<8x8xi1>, vector<8x8xf32>
    %cst_45 = arith.constant dense<0xFF800000> : vector<8xf32>
    %77 = vector.multi_reduction <maximumf>, %76, %cst_45 [1] : vector<8x8xf32> to vector<8xf32>
    %78 = vector.shape_cast %77 : vector<8xf32> to vector<8x1xf32>
    %79 = vector.broadcast %78 : vector<8x1xf32> to vector<8x8xf32>
    %80 = arith.subf %76, %79 : vector<8x8xf32>
    %81 = math.exp %80 : vector<8x8xf32>
    %cst_46 = arith.constant dense<0.000000e+00> : vector<8xf32>
    %82 = vector.multi_reduction <add>, %81, %cst_46 [1] : vector<8x8xf32> to vector<8xf32>
    %83 = vector.shape_cast %82 : vector<8xf32> to vector<8x1xf32>
    %84 = tpu.reciprocal %83 {approx = true} : vector<8x1xf32> -> vector<8x1xf32>
    %85 = vector.broadcast %84 : vector<8x1xf32> to vector<8x8xf32>
    %86 = arith.mulf %81, %85 : vector<8x8xf32>
    %87 = arith.truncf %86 : vector<8x8xf32> to vector<8x8xbf16>
    %88 = arith.truncf %71 : vector<8x16xf32> to vector<8x16xbf16>
    %cst_47 = arith.constant dense<0.000000e+00> : vector<8x16xf32>
    %89 = tpu.matmul %87, %88, %cst_47 {dimension_numbers = #tpu.dot_dimension_numbers<[1], [0], [0], [1], [0, 0, 1, 1], [], []>} : vector<8x8xbf16>, vector<8x16xbf16>, vector<8x16xf32> -> vector<8x16xf32>
    %90 = arith.truncf %89 : vector<8x16xf32> to vector<8x16xbf16>
    %c1_48 = arith.constant 1 : index
    %c0_49 = arith.constant 0 : index
    %c0_50 = arith.constant 0 : index
    %91 = vector.load %arg7[%c1_48, %c0_49, %c0_50] : memref<2x16x32xbf16, #tpu.memory_space<vmem>>, vector<1x16x32xbf16>
    %92 = vector.shape_cast %91 : vector<1x16x32xbf16> to vector<16x32xbf16>
    %cst_51 = arith.constant dense<0.000000e+00> : vector<8x32xf32>
    %93 = tpu.matmul %90, %92, %cst_51 {dimension_numbers = #tpu.dot_dimension_numbers<[1], [0], [0], [1], [0, 0, 1, 1], [], []>} : vector<8x16xbf16>, vector<16x32xbf16>, vector<8x32xf32> -> vector<8x32xf32>
    %94 = arith.addf %62, %93 : vector<8x32xf32>
    %95 = arith.addf %1, %94 : vector<8x32xf32>
    %c0_52 = arith.constant 0 : index
    %c0_53 = arith.constant 0 : index
    %96 = vector.load %arg8[%c0_52, %c0_53] : memref<1x32xf32, #tpu.memory_space<vmem>>, vector<1x32xf32>
    %97 = vector.broadcast %96 : vector<1x32xf32> to vector<8x32xf32>
    %98 = arith.addf %95, %97 : vector<8x32xf32>
    %c0_54 = arith.constant 0 : index
    %c0_55 = arith.constant 0 : index
    %99 = vector.load %arg9[%c0_54, %c0_55] : memref<1x32xf32, #tpu.memory_space<vmem>>, vector<1x32xf32>
    %c0_56 = arith.constant 0 : index
    %c0_57 = arith.constant 0 : index
    %100 = vector.load %arg10[%c0_56, %c0_57] : memref<1x32xf32, #tpu.memory_space<vmem>>, vector<1x32xf32>
    %cst_58 = arith.constant dense<0.000000e+00> : vector<8xf32>
    %101 = vector.multi_reduction <add>, %98, %cst_58 [1] : vector<8x32xf32> to vector<8xf32>
    %102 = vector.shape_cast %101 : vector<8xf32> to vector<8x1xf32>
    %cst_59 = arith.constant 3.200000e+01 : f32
    %103 = vector.broadcast %cst_59 : f32 to vector<8x1xf32>
    %104 = arith.divf %102, %103 : vector<8x1xf32>
    %105 = vector.broadcast %104 : vector<8x1xf32> to vector<8x32xf32>
    %106 = arith.subf %98, %105 : vector<8x32xf32>
    %107 = arith.mulf %106, %106 : vector<8x32xf32>
    %cst_60 = arith.constant dense<0.000000e+00> : vector<8xf32>
    %108 = vector.multi_reduction <add>, %107, %cst_60 [1] : vector<8x32xf32> to vector<8xf32>
    %109 = vector.shape_cast %108 : vector<8xf32> to vector<8x1xf32>
    %cst_61 = arith.constant 3.200000e+01 : f32
    %110 = vector.broadcast %cst_61 : f32 to vector<8x1xf32>
    %111 = arith.divf %109, %110 : vector<8x1xf32>
    %112 = vector.broadcast %104 : vector<8x1xf32> to vector<8x32xf32>
    %113 = arith.subf %98, %112 : vector<8x32xf32>
    %cst_62 = arith.constant 9.99999974E-6 : f32
    %114 = vector.broadcast %cst_62 : f32 to vector<8x1xf32>
    %115 = arith.addf %111, %114 : vector<8x1xf32>
    %116 = math.rsqrt %115 : vector<8x1xf32>
    %117 = vector.broadcast %116 : vector<8x1xf32> to vector<8x32xf32>
    %118 = arith.mulf %113, %117 : vector<8x32xf32>
    %119 = vector.broadcast %99 : vector<1x32xf32> to vector<8x32xf32>
    %120 = arith.mulf %118, %119 : vector<8x32xf32>
    %121 = vector.broadcast %100 : vector<1x32xf32> to vector<8x32xf32>
    %122 = arith.addf %120, %121 : vector<8x32xf32>
    %123 = arith.truncf %122 : vector<8x32xf32> to vector<8x32xbf16>
    %c0_63 = arith.constant 0 : index
    %c0_64 = arith.constant 0 : index
    %124 = vector.load %arg11[%c0_63, %c0_64] : memref<32x128xbf16, #tpu.memory_space<vmem>>, vector<32x128xbf16>
    %cst_65 = arith.constant dense<0.000000e+00> : vector<8x128xf32>
    %125 = tpu.matmul %123, %124, %cst_65 {dimension_numbers = #tpu.dot_dimension_numbers<[1], [0], [0], [1], [0, 0, 1, 1], [], []>} : vector<8x32xbf16>, vector<32x128xbf16>, vector<8x128xf32> -> vector<8x128xf32>
    %c0_66 = arith.constant 0 : index
    %c0_67 = arith.constant 0 : index
    %126 = vector.load %arg12[%c0_66, %c0_67] : memref<1x128xf32, #tpu.memory_space<vmem>>, vector<1x128xf32>
    %127 = vector.broadcast %126 : vector<1x128xf32> to vector<8x128xf32>
    %128 = arith.addf %125, %127 : vector<8x128xf32>
    %cst_68 = arith.constant 5.000000e-01 : f32
    %129 = vector.broadcast %cst_68 : f32 to vector<8x128xf32>
    %130 = arith.mulf %129, %128 : vector<8x128xf32>
    %cst_69 = arith.constant 4.471500e-02 : f32
    %131 = vector.broadcast %cst_69 : f32 to vector<8x128xf32>
    %132 = arith.mulf %131, %128 : vector<8x128xf32>
    %133 = arith.mulf %132, %128 : vector<8x128xf32>
    %134 = arith.mulf %133, %128 : vector<8x128xf32>
    %135 = arith.addf %128, %134 : vector<8x128xf32>
    %cst_70 = arith.constant 0.797884583 : f32
    %136 = vector.broadcast %cst_70 : f32 to vector<8x128xf32>
    %137 = arith.mulf %136, %135 : vector<8x128xf32>
    %138 = math.tanh %137 : vector<8x128xf32>
    %cst_71 = arith.constant 1.000000e+00 : f32
    %139 = vector.broadcast %cst_71 : f32 to vector<8x128xf32>
    %140 = arith.addf %139, %138 : vector<8x128xf32>
    %141 = arith.mulf %130, %140 : vector<8x128xf32>
    %142 = arith.truncf %141 : vector<8x128xf32> to vector<8x128xbf16>
    %c0_72 = arith.constant 0 : index
    %c0_73 = arith.constant 0 : index
    %143 = vector.load %arg13[%c0_72, %c0_73] : memref<128x32xbf16, #tpu.memory_space<vmem>>, vector<128x32xbf16>
    %cst_74 = arith.constant dense<0.000000e+00> : vector<8x32xf32>
    %144 = tpu.matmul %142, %143, %cst_74 {dimension_numbers = #tpu.dot_dimension_numbers<[1], [0], [0], [1], [0, 0, 1, 1], [], []>} : vector<8x128xbf16>, vector<128x32xbf16>, vector<8x32xf32> -> vector<8x32xf32>
    %145 = arith.addf %98, %144 : vector<8x32xf32>
    %c0_75 = arith.constant 0 : index
    %c0_76 = arith.constant 0 : index
    %146 = vector.load %arg14[%c0_75, %c0_76] : memref<1x32xf32, #tpu.memory_space<vmem>>, vector<1x32xf32>
    %147 = vector.broadcast %146 : vector<1x32xf32> to vector<8x32xf32>
    %148 = arith.addf %145, %147 : vector<8x32xf32>
    %c0_77 = arith.constant 0 : index
    %c0_78 = arith.constant 0 : index
    %149 = vector.load %arg15[%c0_77, %c0_78] : memref<1x32xf32, #tpu.memory_space<vmem>>, vector<1x32xf32>
    %c0_79 = arith.constant 0 : index
    %c0_80 = arith.constant 0 : index
    %150 = vector.load %arg16[%c0_79, %c0_80] : memref<1x32xf32, #tpu.memory_space<vmem>>, vector<1x32xf32>
    %cst_81 = arith.constant dense<0.000000e+00> : vector<8xf32>
    %151 = vector.multi_reduction <add>, %148, %cst_81 [1] : vector<8x32xf32> to vector<8xf32>
    %152 = vector.shape_cast %151 : vector<8xf32> to vector<8x1xf32>
    %cst_82 = arith.constant 3.200000e+01 : f32
    %153 = vector.broadcast %cst_82 : f32 to vector<8x1xf32>
    %154 = arith.divf %152, %153 : vector<8x1xf32>
    %155 = vector.broadcast %154 : vector<8x1xf32> to vector<8x32xf32>
    %156 = arith.subf %148, %155 : vector<8x32xf32>
    %157 = arith.mulf %156, %156 : vector<8x32xf32>
    %cst_83 = arith.constant dense<0.000000e+00> : vector<8xf32>
    %158 = vector.multi_reduction <add>, %157, %cst_83 [1] : vector<8x32xf32> to vector<8xf32>
    %159 = vector.shape_cast %158 : vector<8xf32> to vector<8x1xf32>
    %cst_84 = arith.constant 3.200000e+01 : f32
    %160 = vector.broadcast %cst_84 : f32 to vector<8x1xf32>
    %161 = arith.divf %159, %160 : vector<8x1xf32>
    %162 = vector.broadcast %154 : vector<8x1xf32> to vector<8x32xf32>
    %163 = arith.subf %148, %162 : vector<8x32xf32>
    %cst_85 = arith.constant 9.99999974E-6 : f32
    %164 = vector.broadcast %cst_85 : f32 to vector<8x1xf32>
    %165 = arith.addf %161, %164 : vector<8x1xf32>
    %166 = math.rsqrt %165 : vector<8x1xf32>
    %167 = vector.broadcast %166 : vector<8x1xf32> to vector<8x32xf32>
    %168 = arith.mulf %163, %167 : vector<8x32xf32>
    %169 = vector.broadcast %149 : vector<1x32xf32> to vector<8x32xf32>
    %170 = arith.mulf %168, %169 : vector<8x32xf32>
    %171 = vector.broadcast %150 : vector<1x32xf32> to vector<8x32xf32>
    %172 = arith.addf %170, %171 : vector<8x32xf32>
    %173 = arith.truncf %172 : vector<8x32xf32> to vector<8x32xbf16>
    %c0_86 = arith.constant 0 : index
    %c0_87 = arith.constant 0 : index
    %174 = vector.load %arg17[%c0_86, %c0_87] : memref<32x16xbf16, #tpu.memory_space<vmem>>, vector<32x16xbf16>
    %cst_88 = arith.constant dense<0.000000e+00> : vector<8x16xf32>
    %175 = tpu.matmul %173, %174, %cst_88 {dimension_numbers = #tpu.dot_dimension_numbers<[1], [0], [0], [1], [0, 0, 1, 1], [], []>} : vector<8x32xbf16>, vector<32x16xbf16>, vector<8x16xf32> -> vector<8x16xf32>
    %c0_89 = arith.constant 0 : index
    %c0_90 = arith.constant 0 : index
    %176 = vector.load %arg18[%c0_89, %c0_90] : memref<1x16xf32, #tpu.memory_space<vmem>>, vector<1x16xf32>
    %177 = vector.broadcast %176 : vector<1x16xf32> to vector<8x16xf32>
    %178 = arith.addf %175, %177 : vector<8x16xf32>
    %c0_91 = arith.constant 0 : index
    %c0_92 = arith.constant 0 : index
    %c0_93 = arith.constant 0 : index
    %179 = vector.load %arg19[%c0_91, %c0_92, %c0_93] : memref<1x8x16xf32, #tpu.memory_space<vmem>>, vector<1x8x16xf32>
    %180 = vector.shape_cast %179 : vector<1x8x16xf32> to vector<8x16xf32>
    %181 = vector.shape_cast %178 : vector<8x16xf32> to vector<1x8x16xf32>
    tpu.vector_store %arg19[%c0_91, %c0_92, %c0_93], %181 {strides = array<i32>} : memref<1x8x16xf32, #tpu.memory_space<vmem>>, vector<1x8x16xf32>,
    return
  }
  func.func @transform_0(%arg0: i32) -> (i32, i32, i32) {
    %c0_i32 = arith.constant 0 : i32
    %c0_i32_0 = arith.constant 0 : i32
    %c0_i32_1 = arith.constant 0 : i32
    return %arg0, %c0_i32, %c0_i32_0 : i32, i32, i32
  }
  func.func @transform_1(%arg0: i32) -> (i32, i32) {
    %c0_i32 = arith.constant 0 : i32
    %c0_i32_0 = arith.constant 0 : i32
    %c0_i32_1 = arith.constant 0 : i32
    return %c0_i32, %c0_i32_0 : i32, i32
  }
  func.func @transform_2(%arg0: i32) -> (i32, i32) {
    %c0_i32 = arith.constant 0 : i32
    %c0_i32_0 = arith.constant 0 : i32
    %c0_i32_1 = arith.constant 0 : i32
    return %c0_i32, %c0_i32_0 : i32, i32
  }
  func.func @transform_3(%arg0: i32) -> (i32, i32, i32) {
    %c0_i32 = arith.constant 0 : i32
    %c0_i32_0 = arith.constant 0 : i32
    %c0_i32_1 = arith.constant 0 : i32
    %c0_i32_2 = arith.constant 0 : i32
    return %c0_i32, %c0_i32_0, %c0_i32_1 : i32, i32, i32
  }
  func.func @transform_4(%arg0: i32) -> (i32, i32, i32) {
    %c0_i32 = arith.constant 0 : i32
    %c0_i32_0 = arith.constant 0 : i32
    %c0_i32_1 = arith.constant 0 : i32
    %c0_i32_2 = arith.constant 0 : i32
    return %c0_i32, %c0_i32_0, %c0_i32_1 : i32, i32, i32
  }
  func.func @transform_5(%arg0: i32) -> (i32, i32, i32) {
    %c0_i32 = arith.constant 0 : i32
    %c0_i32_0 = arith.constant 0 : i32
    %c0_i32_1 = arith.constant 0 : i32
    %c0_i32_2 = arith.constant 0 : i32
    return %c0_i32, %c0_i32_0, %c0_i32_1 : i32, i32, i32
  }
  func.func @transform_6(%arg0: i32) -> (i32, i32, i32) {
    %c0_i32 = arith.constant 0 : i32
    %c0_i32_0 = arith.constant 0 : i32
    %c0_i32_1 = arith.constant 0 : i32
    %c0_i32_2 = arith.constant 0 : i32
    return %c0_i32, %c0_i32_0, %c0_i32_1 : i32, i32, i32
  }
  func.func @transform_7(%arg0: i32) -> (i32, i32) {
    %c0_i32 = arith.constant 0 : i32
    %c0_i32_0 = arith.constant 0 : i32
    %c0_i32_1 = arith.constant 0 : i32
    return %c0_i32, %c0_i32_0 : i32, i32
  }
  func.func @transform_8(%arg0: i32) -> (i32, i32) {
    %c0_i32 = arith.constant 0 : i32
    %c0_i32_0 = arith.constant 0 : i32
    %c0_i32_1 = arith.constant 0 : i32
    return %c0_i32, %c0_i32_0 : i32, i32
  }
  func.func @transform_9(%arg0: i32) -> (i32, i32) {
    %c0_i32 = arith.constant 0 : i32
    %c0_i32_0 = arith.constant 0 : i32
    %c0_i32_1 = arith.constant 0 : i32
    return %c0_i32, %c0_i32_0 : i32, i32
  }
  func.func @transform_10(%arg0: i32) -> (i32, i32) {
    %c0_i32 = arith.constant 0 : i32
    %c0_i32_0 = arith.constant 0 : i32
    %c0_i32_1 = arith.constant 0 : i32
    return %c0_i32, %c0_i32_0 : i32, i32
  }
  func.func @transform_11(%arg0: i32) -> (i32, i32) {
    %c0_i32 = arith.constant 0 : i32
    %c0_i32_0 = arith.constant 0 : i32
    %c0_i32_1 = arith.constant 0 : i32
    return %c0_i32, %c0_i32_0 : i32, i32
  }
  func.func @transform_12(%arg0: i32) -> (i32, i32) {
    %c0_i32 = arith.constant 0 : i32
    %c0_i32_0 = arith.constant 0 : i32
    %c0_i32_1 = arith.constant 0 : i32
    return %c0_i32, %c0_i32_0 : i32, i32
  }
  func.func @transform_13(%arg0: i32) -> (i32, i32) {
    %c0_i32 = arith.constant 0 : i32
    %c0_i32_0 = arith.constant 0 : i32
    %c0_i32_1 = arith.constant 0 : i32
    return %c0_i32, %c0_i32_0 : i32, i32
  }
  func.func @transform_14(%arg0: i32) -> (i32, i32) {
    %c0_i32 = arith.constant 0 : i32
    %c0_i32_0 = arith.constant 0 : i32
    %c0_i32_1 = arith.constant 0 : i32
    return %c0_i32, %c0_i32_0 : i32, i32
  }
  func.func @transform_15(%arg0: i32) -> (i32, i32) {
    %c0_i32 = arith.constant 0 : i32
    %c0_i32_0 = arith.constant 0 : i32
    %c0_i32_1 = arith.constant 0 : i32
    return %c0_i32, %c0_i32_0 : i32, i32
  }
  func.func @transform_16(%arg0: i32) -> (i32, i32) {
    %c0_i32 = arith.constant 0 : i32
    %c0_i32_0 = arith.constant 0 : i32
    %c0_i32_1 = arith.constant 0 : i32
    return %c0_i32, %c0_i32_0 : i32, i32
  }
  func.func @transform_17(%arg0: i32) -> (i32, i32) {
    %c0_i32 = arith.constant 0 : i32
    %c0_i32_0 = arith.constant 0 : i32
    %c0_i32_1 = arith.constant 0 : i32
    return %c0_i32, %c0_i32_0 : i32, i32
  }
  func.func @transform_18(%arg0: i32) -> (i32, i32, i32) {
    %c0_i32 = arith.constant 0 : i32
    %c0_i32_0 = arith.constant 0 : i32
    %c0_i32_1 = arith.constant 0 : i32
    return %arg0, %c0_i32, %c0_i32_0 : i32, i32, i32
  }
}

</mosaic_0001>

<bundles_post_ra>
// kernel: custom_gptneo_forward.3
= control target key start
LH: loop header
LB: loop body
LE: loop exit
PB: predicated region body
PF: predicated region fallthrough
CT: control target
= control target key end

     0   :  { %v423_v3 = vmov 2.0   ;;  %vm31_vm0 = vcmask 130048   ;;  %vm84_vm5 = vcmask 1041409   ;;  %vm330_vm6 = vcmask 1041408   ;;  %s532_s3 = inlined_call_operand.vmem [shape: bf16[8,16,4], index: 3, kind: input, shape index: {}]   ;;  %s533_s0 = inlined_call_operand.vmem [shape: f32[2,8,16], index: 0, kind: input, shape index: {}]   ;;  %s534_s1 = inlined_call_operand.vmem [shape: f32[8,16], index: 1, kind: input, shape index: {}]   ;;  %s535_s2 = inlined_call_operand.vmem [shape: f32[8,16], index: 2, kind: input, shape index: {}]   ;;  %s536_s4 = inlined_call_operand.vmem [shape: f32[1,4], index: 4, kind: input, shape index: {}]   ;;  %s537_s5 = inlined_call_operand.vmem [shape: bf16[4,1], index: 5, kind: input, shape index: {}]   ;;  %s538_s6 = inlined_call_operand.<no memory space> [shape: f32[1,1], index: 6, kind: input, shape index: {}]   ;;  %s539_s7 = inlined_call_operand.vmem [shape: f32[2,1], index: 7, kind: output, shape index: {}]  }
   0x1   :  { %v409_v0 = vld [vmem:[%s532_s3 + $0x8] sm:$0xff]  ;;  %v408_v1 = vld [vmem:[%s532_s3] sm:$0xff]  ;;  %v410_v2 = vld [vmem:[%s532_s3 + $0x10] sm:$0xff]  ;;  %419 = vrcp.f32 %v423_v3  ;;  %vm326_vm7 = vcmask 31744   ;;  %vm347_vm8 = vcmask 1024  }
   0x2   :  { %v411_v4 = vld [vmem:[%s532_s3 + $0x18] sm:$0xff]  ;;  %103 = vmatpush.bf16.msra.mxu0 %v409_v0  ;;  %128 = vmatpush.bf16.msra.mxu1 %v408_v1  ;;  %v29_v6 = vld [vmem:[%s533_s0] sm:$0xff]  ;;  %v30_v7 = vld [vmem:[%s533_s0 + $0x8] sm:$0xff] }
   0x3   :  { %157 = vmatpush.bf16.msra.mxu2 %v410_v2  ;;  %187 = vmatpush.bf16.msra.mxu3 %v411_v4  ;;  %v32_v9 = vsel %vm31_vm0, %v29_v6, 0.0  ;;  %v33_v10 = vsel %vm31_vm0, %v30_v7, 0.0  ;;  %v414_v26 = vld [vmem:[%s532_s3 + $0x30] sm:$0xff]  ;;  %v412_v27 = vld [vmem:[%s532_s3 + $0x20] sm:$0xff]  ;;  %v415_v28 = vld [vmem:[%s532_s3 + $0x38] sm:$0xff] }
   0x4   :  { %v34_v13 = vadd.f32 %v33_v10, %v32_v9  ;;  %v413_v29 = vld [vmem:[%s532_s3 + $0x28] sm:$0xff]  ;;  %v64_v37 = vld [vmem:[%s534_s1] sm:$0xff] }
   0x5   :  { %v67_v40 = vld [vmem:[%s535_s2] sm:$0xff] }
   0x6   :  { %217 = vmatpush.bf16.msrb.mxu0 %v412_v27  ;;  %247 = vmatpush.bf16.msrb.mxu1 %v413_v29 }
   0x7   :  { %v420_v5 = vpop.eup %419  ;;  %277 = vmatpush.bf16.msrb.mxu2 %v414_v26  ;;  %307 = vmatpush.bf16.msrb.mxu3 %v415_v28 }
   0x8   :  { %v36_v8 = vmul.f32 2.0, %v420_v5  ;;  %vm40_vm1 = vweird.f32 %v420_v5 }
   0xa   :  { %v37_v11 = vsub.f32 1.0, %v36_v8 }
   0xc   :  { %v38_v12 = vmul.f32 %v420_v5, %v37_v11 }
   0xe   :  { %v39_v14 = vadd.f32 %v420_v5, %v38_v12 }
  0x10   :  { %v41_v15 = vsel %vm40_vm1, %v420_v5, %v39_v14 }
  0x11   :  { %v42_v16 = vmul.f32 %v41_v15, %v34_v13 }
  0x13   :  { %v43_v17 = vsub.f32 %v29_v6, %v42_v16  ;;  %v44_v18 = vsub.f32 %v30_v7, %v42_v16 }
  0x15   :  { %v45_v19 = vmul.f32 %v43_v17, %v43_v17  ;;  %v46_v20 = vmul.f32 %v44_v18, %v44_v18 }
  0x17   :  { %v47_v21 = vsel %vm31_vm0, %v45_v19, 0.0  ;;  %v48_v22 = vsel %vm31_vm0, %v46_v20, 0.0 }
  0x18   :  { %v49_v23 = vadd.f32 %v48_v22, %v47_v21  ;;  %v12_v21 = vstv %s538_s6 }
  0x19   :  { %13 = vst [vmem:[#allocation2] sm:$0x1] %v12_v21 }
  0x1a   :  { %v50_v24 = vmul.f32 %v49_v23, %v41_v15 }
  0x1c   :  { %v51_v25 = vadd.f32 1e-05, %v50_v24 }
  0x1e   :  { %421 = vrsqrt.f32 %v51_v25  ;;  %vm58_vm2 = vweird.f32 %v51_v25 }
  0x24   :  { %v422_v30 = vpop.eup %421 }
  0x25   :  { %v53_v31 = vmul.f32 %v422_v30, %v51_v25  ;;  %vm59_vm3 = vweird.f32 %v422_v30 }
  0x26   :  { %vm60_vm4 = vmor %vm58_vm2, %vm59_vm3 }
  0x27   :  { %v54_v32 = vmul.f32 %v422_v30, %v53_v31 }
  0x29   :  { %v55_v33 = vmul.f32 0.5, %v54_v32 }
  0x2b   :  { %v56_v34 = vsub.f32 1.5, %v55_v33 }
  0x2d   :  { %v57_v35 = vmul.f32 %v422_v30, %v56_v34 }
  0x2f   :  { %v61_v36 = vsel %vm60_vm4, %v422_v30, %v57_v35 }
  0x30   :  { %v62_v38 = vmul.f32 %v61_v36, %v43_v17  ;;  %v63_v39 = vmul.f32 %v61_v36, %v44_v18  ;;  %v321_v17 = vld [vmem:[%s537_s5] sm:$0x3] }
  0x31   :  { %v332_v18 = vsel %vm330_vm6, %v321_v17, 0 }
  0x32   :  { %v65_v41 = vmul.f32 %v64_v37, %v62_v38  ;;  %v66_v42 = vmul.f32 %v64_v37, %v63_v39  ;;  %v417_v38 = vld [vmem:[%s536_s4] ss:$0 sm:$0xff] }
  0x34   :  { %v68_v43 = vadd.f32 %v67_v40, %v65_v41  ;;  %v69_v44 = vadd.f32 %v67_v40, %v66_v42 }
  0x36   :  { %v70_v45 = vmax.f32 %v68_v43, 0.0  ;;  %v71_v46 = vmax.f32 %v69_v44, 0.0 }
  0x38   :  { %v72_v47 = vpack.c.bf16 %v70_v45, %v70_v45  ;;  %v73_v48 = vpack.c.bf16 %v71_v46, %v71_v46 }
  0x3a   :  { %v81_v49 = vunpack.c.l.b16 %v72_v47  ;;  %v82_v50 = vunpack.c.l.b16 %v73_v48  ;;  %v418_v47 = vld [vmem:[#allocation2] ss:$0 sm:$0xff] }
  0x3c   :  { %v83_v51 = vrot.slane %v81_v49, 1  ;;  %v109_v52 = vrot.slane %v82_v50, 7  ;;  %v137_v53 = vrot.slane %v81_v49, 2  ;;  %v138_v54 = vrot.slane %v82_v50, 1 }
  0x3d   :  { %v167_v55 = vrot.slane %v81_v49, 3  ;;  %v168_v56 = vrot.slane %v82_v50, 2  ;;  %v197_v1 = vrot.slane %v81_v49, 4  ;;  %v198_v2 = vrot.slane %v82_v50, 3 }
  0x3e   :  { %v85_v57 = vsel %vm84_vm5, %v82_v50, %v83_v51  ;;  %v110_v58 = vsel %vm84_vm5, %v109_v52, %v81_v49  ;;  %v139_v59 = vsel %vm84_vm5, %v138_v54, %v137_v53  ;;  %v227_v3 = vrot.slane %v81_v49, 5 }
  0x3f   :  { %v86_v60 = vpack.c.b16 %v85_v57, %v85_v57  ;;  %v111_v61 = vpack.c.b16 %v110_v58, %v110_v58  ;;  %v140_v62 = vpack.c.b16 %v139_v59, %v139_v59  ;;  %v169_v63 = vsel %vm84_vm5, %v168_v56, %v167_v55 }
  0x40   :  { %v170_v0 = vpack.c.b16 %v169_v63, %v169_v63  ;;  %v228_v4 = vrot.slane %v82_v50, 4  ;;  %v257_v5 = vrot.slane %v81_v49, 6  ;;  %v258_v6 = vrot.slane %v82_v50, 5 }
  0x41   :  { %359 = vmatmul.msk.bf16.vlgmr.msra.gmra.mxu0 %vm31_vm0, %v86_v60  ;;  %364 = vmatmul.msk.bf16.vlgmr.msra.gmra.mxu1 %vm31_vm0, %v111_v61  ;;  %v287_v7 = vrot.slane %v81_v49, 7  ;;  %v288_v8 = vrot.slane %v82_v50, 6  ;;  %v199_v9 = vsel %vm84_vm5, %v198_v2, %v197_v1 }
  0x42   :  { %371 = vmatmul.msk.bf16.vlgmr.msra.gmra.mxu2 %vm31_vm0, %v140_v62  ;;  %378 = vmatmul.msk.bf16.vlgmr.msra.gmra.mxu3 %vm31_vm0, %v170_v0  ;;  %v229_v10 = vsel %vm84_vm5, %v228_v4, %v227_v3  ;;  %v259_v11 = vsel %vm84_vm5, %v258_v6, %v257_v5  ;;  %v200_v13 = vpack.c.b16 %v199_v9, %v199_v9 }
  0x43   :  { %v289_v12 = vsel %vm84_vm5, %v288_v8, %v287_v7  ;;  %v230_v14 = vpack.c.b16 %v229_v10, %v229_v10  ;;  %v260_v15 = vpack.c.b16 %v259_v11, %v259_v11  ;;  %341 = vmatpush.bf16.msra.mxu0 %v332_v18 }
  0x44   :  { %v290_v16 = vpack.c.b16 %v289_v12, %v289_v12 }
  0x51   :  { %385 = vmatmul.msk.bf16.vlgmr.msrb.gmra.mxu0 %vm31_vm0, %v200_v13  ;;  %392 = vmatmul.msk.bf16.vlgmr.msrb.gmra.mxu1 %vm31_vm0, %v230_v14 }
  0x52   :  { %399 = vmatmul.msk.bf16.vlgmr.msrb.gmra.mxu2 %vm31_vm0, %v260_v15  ;;  %406 = vmatmul.msk.bf16.vlgmr.msrb.gmra.mxu3 %vm31_vm0, %v290_v16 }
  0xbe   :  { %v105_v19 = vpop.f32.mrf.mxu0  ;;  %v130_v20 = vpop.f32.mrf.mxu1 }
  0xbf   :  { %v131_v26 = vadd.f32 %v130_v20, %v105_v19 }
  0xc5   :  { %v159_v22 = vpop.f32.mrf.mxu2  ;;  %v189_v23 = vpop.f32.mrf.mxu3 }
  0xc6   :  { %v107_v24 = vpop.f32.mrf.mxu0  ;;  %v132_v25 = vpop.f32.mrf.mxu1  ;;  %v163_v27 = vadd.f32 %v159_v22, %v131_v26 }
  0xc8   :  { %v193_v30 = vadd.f32 %v189_v23, %v163_v27 }
  0xcd   :  { %v161_v28 = vpop.f32.mrf.mxu2  ;;  %v191_v29 = vpop.f32.mrf.mxu3 }
  0xce   :  { %v219_v31 = vpop.f32.mrf.mxu0  ;;  %v249_v32 = vpop.f32.mrf.mxu1 }
  0xcf   :  { %v223_v33 = vadd.f32 %v219_v31, %v193_v30 }
  0xd1   :  { %v253_v34 = vadd.f32 %v249_v32, %v223_v33 }
  0xd5   :  { %v279_v35 = vpop.f32.mrf.mxu2  ;;  %v309_v36 = vpop.f32.mrf.mxu3 }
  0xd6   :  { %v283_v37 = vadd.f32 %v279_v35, %v253_v34  ;;  %v221_v39 = vpop.f32.mrf.mxu0  ;;  %v251_v40 = vpop.f32.mrf.mxu1 }
  0xd8   :  { %v313_v41 = vadd.f32 %v309_v36, %v283_v37 }
  0xda   :  { %v318_v42 = vadd.f32 %v417_v38, %v313_v41 }
  0xdc   :  { %v319_v43 = vmax.f32 %v318_v42, 0.0 }
  0xdd   :  { %v281_v44 = vpop.f32.mrf.mxu2  ;;  %v311_v45 = vpop.f32.mrf.mxu3 }
  0xde   :  { %v320_v46 = vpack.c.bf16 %v319_v43, %v319_v43 }
  0xe0   :  { %407 = vmatmul.msk.bf16.vlgmr.msra.gmra.mxu0 %vm326_vm7, %v320_v46 }
 0x15d   :  { %v343_v48 = vpop.f32.mrf.mxu0 }
 0x15e   :  { %v344_v49 = vadd.f32 %v418_v47, %v343_v48 }
 0x160   :  { %348 = vst.msk [vmem:[%s539_s7] sm:$0x3] %vm347_vm8, %v344_v49 }
 0x165   :  { %v345_v50 = vpop.f32.mrf.mxu0 }

// kernel: custom_gptneo_forward.2
= control target key start
LH: loop header
LB: loop body
LE: loop exit
PB: predicated region body
PF: predicated region fallthrough
CT: control target
= control target key end

     0   :  { %s1560_s27 = smov 0   ;;  %s1741_s0 = inlined_call_operand.vmem [shape: f32[2,8,32], index: 0, kind: input, shape index: {}]   ;;  %s1742_s1 = inlined_call_operand.vmem [shape: f32[1,32], index: 1, kind: input, shape index: {}]   ;;  %s1743_s2 = inlined_call_operand.vmem [shape: f32[1,32], index: 2, kind: input, shape index: {}]   ;;  %s1744_s3 = inlined_call_operand.vmem [shape: bf16[2,32,16], index: 3, kind: input, shape index: {}]   ;;  %s1745_s4 = inlined_call_operand.vmem [shape: bf16[2,32,16], index: 4, kind: input, shape index: {}]   ;;  %s1746_s5 = inlined_call_operand.vmem [shape: bf16[2,32,16], index: 5, kind: input, shape index: {}]   ;;  %s1747_s6 = inlined_call_operand.vmem [shape: bf16[2,16,32], index: 6, kind: input, shape index: {}]   ;;  %s1748_s7 = inlined_call_operand.vmem [shape: f32[1,32], index: 7, kind: input, shape index: {}]   ;;  %s1749_s8 = inlined_call_operand.vmem [shape: f32[1,32], index: 8, kind: input, shape index: {}]   ;;  %s1750_s9 = inlined_call_operand.vmem [shape: f32[1,32], index: 9, kind: input, shape index: {}]   ;;  %s1751_s10 = inlined_call_operand.vmem [shape: bf16[32,128], index: 10, kind: input, shape index: {}]   ;;  %s1752_s11 = inlined_call_operand.vmem [shape: f32[1,128], index: 11, kind: input, shape index: {}]   ;;  %s1753_s12 = inlined_call_operand.vmem [shape: bf16[128,32], index: 12, kind: input, shape index: {}]   ;;  %s1754_s13 = inlined_call_operand.vmem [shape: f32[1,32], index: 13, kind: input, shape index: {}]   ;;  %s1755_s14 = inlined_call_operand.vmem [shape: f32[1,32], index: 14, kind: input, shape index: {}]   ;;  %s1756_s15 = inlined_call_operand.vmem [shape: f32[1,32], index: 15, kind: input, shape index: {}]   ;;  %s1757_s16 = inlined_call_operand.vmem [shape: bf16[32,16], index: 16, kind: input, shape index: {}]   ;;  %s1758_s17 = inlined_call_operand.vmem [shape: f32[1,16], index: 17, kind: input, shape index: {}]   ;;  %s1759_s18 = inlined_call_operand.vmem [shape: f32[2,8,16], index: 18, kind: output, shape index: {}]  }
   0x1   :  { %1760 = sst [smem:[#allocation2_spill]] %s1741_s0 }
   0x2   :  { %1761 = sst [smem:[#allocation3_spill]] %s1742_s1 }
   0x3   :  { %1762 = sst [smem:[#allocation4_spill]] %s1743_s2 }
   0x4 LB: > { %s1252_s28 = sadd.s32 4294967295, %s1462_s27   ;;  %p1256_p0 = scmp.ge.s32.totalorder %s1462_s27, 1  ;;  %s1462_s27 = sphi %s1560_s27, %s28_s27  }
   0x5   : > { %p511_p1 = scmp.lt.s32.totalorder %s1462_s27, 3 }
   0x7   : > { %p512_p2 = pnand %p1256_p0, %p511_p1 }
   0x8   : > { %p563_p3 = scmp.lt.s32.totalorder (!%p512_p2), %s1252_s28, 1  ;;  %s1763_s19 = sld [smem:[#allocation2_spill]] (!%p512_p2) }
   0x9   : > { %515 = sbr.rel (%p512_p2) target bundleno = 2445 (0x98d), region = 92  ;;  %s1765_s21 = sld [smem:[#allocation4_spill]] (!%p512_p2) }
   0xe   : > { %s1767_s28 = smov (!%p563_p3, %s1252_s28), 1  ;;  %vm575_vm0 = vcmask 261120   ;;  %v1464_v2 = vmov 32.0   ;;  %v1394_v14 = vld [vmem:[%s1744_s3 + $0x8] sm:$0xff]  ;;  %v1401_v17 = vld [vmem:[%s1744_s3 + $0x18] sm:$0xff]  ;;  %v1393_v18 = vld [vmem:[%s1744_s3] sm:$0xff]  ;;  %v614_v59 = vlaneseq }
   0xf   : > { %s1257_s29 = sshll.u32 %s1767_s28, 3  ;;  %1438 = vrcp.f32 %v1464_v2  ;;  %v1396_v15 = vld [vmem:[%s1745_s4 + $0x8] sm:$0xff]  ;;  %644 = vmatpush.bf16.msra.mxu0 %v1394_v14  ;;  %792 = vmatpush.bf16.msra.mxu1 %v1401_v17  ;;  %v1395_v19 = vld [vmem:[%s1745_s4] sm:$0xff]  ;;  %v1400_v21 = vld [vmem:[%s1744_s3 + $0x10] sm:$0xff]  ;;  %vm711_vm5 = vcmask 130048   ;;  %vm749_vm6 = vcmask 1043456  }
  0x10   : > { %s566_s1 = scalar_lea.vmem %s1763_s19, %s1257_s29  ;;  %v1398_v16 = vld [vmem:[%s1746_s5 + $0x8] sm:$0xff]  ;;  %673 = vmatpush.bf16.msra.mxu3 %v1396_v15  ;;  %v1397_v20 = vld [vmem:[%s1746_s5] sm:$0xff]  ;;  %v1403_v23 = vld [vmem:[%s1745_s4 + $0x18] sm:$0xff]  ;;  %s1764_s19 = sld [smem:[#allocation3_spill]]  ;;  %v615_v60 = vshrl.u32 %v614_v59, 7  ;;  %v617_v61 = vand.u32 127, %v614_v59 }
  0x11   : > { %v1576_v0 = vld [vmem:[%s566_s1] sm:$0xff]  ;;  %702 = vmatpush.bf16.msra.mxu2 %v1398_v16  ;;  %v1402_v25 = vld [vmem:[%s1745_s4 + $0x10] sm:$0xff]  ;;  %v1405_v45 = vld [vmem:[%s1746_s5 + $0x18] sm:$0xff]  ;;  %vm732_vm8 = vcmask 64512   ;;  %s570_s23 = scalar_lea.vmem %s1759_s18, %s1257_s29 }
  0x12   : > { %v576_v1 = vsel %vm575_vm0, %v1576_v0, 0.0  ;;  %v1429_v35 = vld [vmem:[%s1765_s21] ss:$0 sm:$0xff]  ;;  %v1404_v51 = vld [vmem:[%s1746_s5 + $0x10] sm:$0xff]  ;;  %vm618_vm7 = vcmp.le.s32.totalorder %v617_v61, %v615_v60 }
  0x13   : > { %577 = vadd.xlane.f32.xlu0 %v576_v1  ;;  %645 = vmatpush.bf16.msra.mxu0 %v1393_v18  ;;  %v1399_v18 = vld [vmem:[%s1747_s6] sm:$0xff] }
  0x14   : > { %674 = vmatpush.bf16.msra.mxu3 %v1395_v19  ;;  %793 = vmatpush.bf16.msra.mxu1 %v1400_v21 }
  0x15   : > { %v1439_v3 = vpop.eup %1438  ;;  %703 = vmatpush.bf16.msra.mxu2 %v1397_v20 }
  0x16   : > { %v580_v4 = vmul.f32 32.0, %v1439_v3  ;;  %vm584_vm1 = vweird.f32 %v1439_v3  ;;  %v1428_v33 = vld [vmem:[%s1764_s19] ss:$0 sm:$0xff] }
  0x18   : > { %v581_v5 = vsub.f32 1.0, %v580_v4 }
  0x19   : > { %822 = vmatpush.bf16.msrb.mxu2 %v1403_v23 }
  0x1a   : > { %v582_v6 = vmul.f32 %v1439_v3, %v581_v5 }
  0x1c   : > { %v583_v7 = vadd.f32 %v1439_v3, %v582_v6 }
  0x1d   : > { %823 = vmatpush.bf16.msrb.mxu2 %v1402_v25 }
  0x1e   : > { %v1580_v8 = vsel %vm584_vm1, %v1439_v3, %v583_v7 }
  0x86   : > { %v578_v9 = vpop.xlane.xlu0 %577 }
  0x87   : > { %v586_v10 = vmul.f32 %v1580_v8, %v578_v9 }
  0x89   : > { %v587_v11 = vsub.f32 %v1576_v0, %v586_v10 }
  0x8b   : > { %v588_v12 = vmul.f32 %v587_v11, %v587_v11 }
  0x8d   : > { %v589_v13 = vsel %vm575_vm0, %v588_v12, 0.0 }
  0x8e   : > { %590 = vadd.xlane.f32.xlu0 %v589_v13 }
 0x101   : > { %v591_v22 = vpop.xlane.xlu0 %590 }
 0x102   : > { %v592_v24 = vmul.f32 %v591_v22, %v1580_v8 }
 0x104   : > { %v593_v26 = vadd.f32 1e-05, %v592_v24 }
 0x106   : > { %1440 = vrsqrt.f32 %v593_v26  ;;  %vm600_vm3 = vweird.f32 %v593_v26 }
 0x10c   : > { %v1441_v27 = vpop.eup %1440 }
 0x10d   : > { %v595_v28 = vmul.f32 %v1441_v27, %v593_v26  ;;  %vm601_vm2 = vweird.f32 %v1441_v27 }
 0x10e   : > { %vm602_vm4 = vmor %vm600_vm3, %vm601_vm2 }
 0x10f   : > { %v596_v29 = vmul.f32 %v1441_v27, %v595_v28 }
 0x111   : > { %v597_v30 = vmul.f32 0.5, %v596_v29 }
 0x113   : > { %v598_v31 = vsub.f32 1.5, %v597_v30 }
 0x115   : > { %v599_v32 = vmul.f32 %v1441_v27, %v598_v31 }
 0x117   : > { %v603_v34 = vsel %vm602_vm4, %v1441_v27, %v599_v32 }
 0x118   : > { %v604_v36 = vmul.f32 %v603_v34, %v587_v11 }
 0x11a   : > { %v608_v37 = vmul.f32 %v1428_v33, %v604_v36  ;;  %v1406_v33 = vld [vmem:[%s1747_s6 + $0x8] sm:$0xff] }
 0x11c   : > { %v612_v38 = vadd.f32 %v1429_v35, %v608_v37 }
 0x11e   : > { %v613_v39 = vpack.c.bf16 %v612_v38, %v612_v38 }
 0x120   : > { %1267 = vmatmul.msk.bf16.vlgmr.msra.gmra.mxu0 %vm575_vm0, %v613_v39  ;;  %1276 = vmatmul.msk.bf16.vlgmr.msra.gmra.mxu3 %vm575_vm0, %v613_v39 }
 0x121   : > { %1285 = vmatmul.msk.bf16.vlgmr.msra.gmra.mxu2 %vm575_vm0, %v613_v39  ;;  %1300 = vmatmul.msk.bf16.vlgmr.msra.gmra.mxu1 %vm575_vm0, %v613_v39 }
 0x122   : > { %933 = vmatpush.bf16.msra.mxu2 %v1406_v33 }
 0x131   : > { %1313 = vmatmul.msk.bf16.vlgmr.msrb.gmra.mxu2 %vm575_vm0, %v613_v39 }
 0x19d   : > { %v647_v40 = vpop.f32.mrf.mxu0 }
 0x19e   : > { %v795_v41 = vpop.f32.mrf.mxu1  ;;  %v709_v53 = vpack.c.bf16 %v647_v40, %v647_v40 }
 0x19f   : > { %v859_v17 = vpack.c.bf16 %v795_v41, %v795_v41 }
 0x1a3   : > { %v676_v42 = vpop.f32.mrf.mxu3 }
 0x1a4   : > { %v710_v43 = vpack.c.bf16 %v676_v42, %v676_v42  ;;  %v705_v44 = vpop.f32.mrf.mxu2 }
 0x1a5   : > { %v745_v46 = vpack.c.bf16 %v705_v44, %v705_v44  ;;  %v649_v47 = vpop.f32.mrf.mxu0 }
 0x1a6   : > { %v797_v48 = vpop.f32.mrf.mxu1  ;;  %v716_v49 = vsel %vm711_vm5, %v710_v43, 0  ;;  %v1430_v43 = vld [vmem:[%s1748_s7] ss:$0 sm:$0xff] }
 0x1a7   : > { %725 = vmatpush.bf16.xpose.msrb.mxu3 %v716_v49  ;;  %v751_v50 = vsel %vm749_vm6, %v745_v46, 0 }
 0x1a8   : > { %760 = vmatpush.bf16.msrb.mxu0 %v751_v50 }
 0x1ab   : > { %v678_v52 = vpop.f32.mrf.mxu3 }
 0x1ac   : > { %v707_v54 = vpop.f32.mrf.mxu2 }
 0x1ad   : > { %v1416_v54 = vld [vmem:[%s1753_s12 + $0x38] sm:$0xff] }
 0x1ae   : > { %1286 = vmatmul.msk.bf16.vlgmr.msrb.gmra.mxu3 %vm711_vm5, %v709_v53  ;;  %v1407_v53 = vld [vmem:[%s1751_s10] sm:$0xff] }
 0x1af   : > { %852 = vmatpush.bf16.msra.mxu3 %v1405_v45 }
 0x1b3   : > { %853 = vmatpush.bf16.msra.mxu3 %v1404_v51 }
 0x1b4   : > { %v825_v55 = vpop.f32.mrf.mxu2 }
 0x1b5   : > { %v860_v56 = vpack.c.bf16 %v825_v55, %v825_v55 }
 0x1b7   : > { %v865_v57 = vsel %vm711_vm5, %v860_v56, 0  ;;  %955 = vmatpush.bf16.msrb.mxu3 %v1399_v18 }
 0x1b8   : > { %874 = vmatpush.bf16.xpose.msra.mxu0 %v865_v57  ;;  %v1415_v57 = vld [vmem:[%s1753_s12 + $0x30] sm:$0xff] }
 0x1bc   : > { %v827_v58 = vpop.f32.mrf.mxu2 }
 0x1be   : > { %1326 = vmatmul.msk.bf16.vlgmr.msra.gmra.mxu3 %vm575_vm0, %v613_v39 }
 0x231   : > { %v727_v62 = vpop.f32.mrf.mxu3 }
 0x232   : > { %v731_v63 = vsel %vm618_vm7, %v727_v62, -1e+30 }
 0x233   : > { %v733_v1 = vsel %vm732_vm8, %v731_v63, -inf }
 0x234   : > { %734 = vmax.xlane.f32.xlu1 %v733_v1 }
 0x239   : > { %v729_v2 = vpop.f32.mrf.mxu3 }
 0x23a   : > { %v1431_v2 = vld [vmem:[%s1749_s8] ss:$0 sm:$0xff] }
 0x241   : > { %v855_v3 = vpop.f32.mrf.mxu3 }
 0x242   : > { %v893_v4 = vpack.c.bf16 %v855_v3, %v855_v3 }
 0x244   : > { %v898_v5 = vsel %vm749_vm6, %v893_v4, 0 }
 0x245   : > { %907 = vmatpush.bf16.msrb.mxu1 %v898_v5  ;;  %v1432_v5 = vld [vmem:[%s1750_s9] ss:$0 sm:$0xff] }
 0x249   : > { %v857_v6 = vpop.f32.mrf.mxu3  ;;  %1110 = vmatpush.bf16.msra.mxu1 %v1416_v54 }
 0x24d   : > { %1111 = vmatpush.bf16.msra.mxu1 %v1415_v57  ;;  %v1437_v57 = vld [vmem:[%s1758_s17] ss:$0 sm:$0xff] }
 0x2a7   : > { %v735_v7 = vpop.xlane.xlu1 %734 }
 0x2a8   : > { %v736_v9 = vsub.f32 %v731_v63, %v735_v7 }
 0x2aa   : > { %v737_v10 = vmul.f32 1.442695, %v736_v9 }
 0x2ac   : > { %1442 = vpow2.f32 %v737_v10  ;;  %v1414_v10 = vld [vmem:[%s1753_s12 + $0x28] sm:$0xff] }
 0x2ad   : > { %1112 = vmatpush.bf16.msra.mxu1 %v1414_v10 }
 0x2b2   : > { %v1443_v11 = vpop.eup %1442 }
 0x2b3   : > { %v739_v12 = vsel %vm732_vm8, %v1443_v11, 0.0 }
 0x2b4   : > { %740 = vadd.xlane.f32.xlu1 %v739_v12  ;;  %v1412_v12 = vld [vmem:[%s1753_s12 + $0x18] sm:$0xff] }
 0x327   : > { %v741_v13 = vpop.xlane.xlu1 %740 }
 0x328   : > { %1444 = vrcp.f32 %v741_v13  ;;  %v1411_v13 = vld [vmem:[%s1753_s12 + $0x10] sm:$0xff] }
 0x32e   : > { %v1445_v14 = vpop.eup %1444 }
 0x32f   : > { %v743_v15 = vmul.f32 %v1445_v14, %v1443_v11  ;;  %v1413_v11 = vld [vmem:[%s1753_s12 + $0x20] sm:$0xff]  ;;  %v1410_v14 = vld [vmem:[%s1753_s12 + $0x8] sm:$0xff] }
 0x330   : > { %1113 = vmatpush.bf16.msra.mxu1 %v1413_v11 }
 0x331   : > { %v744_v16 = vpack.c.bf16 %v743_v15, %v743_v15  ;;  %v1409_v15 = vld [vmem:[%s1753_s12] sm:$0xff] }
 0x333   : > { %1287 = vmatmul.msk.bf16.vlgmr.msrb.gmra.mxu0 %vm732_vm8, %v744_v16  ;;  %v1433_v16 = vld [vmem:[%s1752_s11] ss:$0 sm:$0xff] }
 0x334   : > { %1114 = vmatpush.bf16.msra.mxu1 %v1412_v12 }
 0x338   : > { %1115 = vmatpush.bf16.msra.mxu1 %v1411_v13 }
 0x33c   : > { %1116 = vmatpush.bf16.msra.mxu1 %v1410_v14 }
 0x340   : > { %1117 = vmatpush.bf16.msra.mxu1 %v1409_v15 }
 0x343   : > { %1327 = vmatmul.msk.bf16.vlgmr.msra.gmra.mxu0 %vm711_vm5, %v859_v17 }
 0x3b0   : > { %v762_v19 = vpop.f32.mrf.mxu0 }
 0x3b1   : > { %v766_v20 = vpack.c.bf16 %v762_v19, %v762_v19 }
 0x3b3   : > { %1340 = vmatmul.msk.bf16.vlgmr.msrb.gmra.mxu3 %vm711_vm5, %v766_v20 }
 0x3b8   : > { %v764_v21 = vpop.f32.mrf.mxu0 }
 0x3c0   : > { %v876_v22 = vpop.f32.mrf.mxu0 }
 0x3c1   : > { %v880_v23 = vsel %vm618_vm7, %v876_v22, -1e+30 }
 0x3c2   : > { %v881_v24 = vsel %vm732_vm8, %v880_v23, -inf }
 0x3c3   : > { %882 = vmax.xlane.f32.xlu2 %v881_v24 }
 0x3c8   : > { %v878_v25 = vpop.f32.mrf.mxu0 }
 0x436   : > { %v957_v26 = vpop.f32.mrf.mxu3  ;;  %v883_v27 = vpop.xlane.xlu2 %882 }
 0x437   : > { %v884_v28 = vsub.f32 %v880_v23, %v883_v27 }
 0x439   : > { %v885_v29 = vmul.f32 1.442695, %v884_v28 }
 0x43b   : > { %1446 = vpow2.f32 %v885_v29 }
 0x43e   : > { %v959_v30 = vpop.f32.mrf.mxu3 }
 0x43f   : > { %v1434_v30 = vld [vmem:[%s1754_s13] ss:$0 sm:$0xff] }
 0x441   : > { %v1447_v31 = vpop.eup %1446 }
 0x442   : > { %v887_v32 = vsel %vm732_vm8, %v1447_v31, 0.0 }
 0x443   : > { %888 = vadd.xlane.f32.xlu2 %v887_v32 }
 0x4b6   : > { %v889_v34 = vpop.xlane.xlu2 %888 }
 0x4b7   : > { %1448 = vrcp.f32 %v889_v34 }
 0x4bd   : > { %v1449_v35 = vpop.eup %1448 }
 0x4be   : > { %v891_v36 = vmul.f32 %v1449_v35, %v1447_v31 }
 0x4c0   : > { %v892_v37 = vpack.c.bf16 %v891_v36, %v891_v36 }
 0x4c2   : > { %1328 = vmatmul.msk.bf16.vlgmr.msrb.gmra.mxu1 %vm732_vm8, %v892_v37 }
 0x53f   : > { %v909_v38 = vpop.f32.mrf.mxu1 }
 0x540   : > { %v913_v39 = vpack.c.bf16 %v909_v38, %v909_v38 }
 0x542   : > { %1335 = vmatmul.msk.bf16.vlgmr.msra.gmra.mxu2 %vm711_vm5, %v913_v39 }
 0x547   : > { %v911_v40 = vpop.f32.mrf.mxu1 }
 0x5c5   : > { %v935_v41 = vpop.f32.mrf.mxu2 }
 0x5c6   : > { %v958_v42 = vadd.f32 %v957_v26, %v935_v41  ;;  %v1418_v41 = vld [vmem:[%s1757_s16 + $0x8] sm:$0xff] }
 0x5c7   : > { %1191 = vmatpush.bf16.msrb.mxu2 %v1418_v41 }
 0x5c8   : > { %v961_v44 = vadd.f32 %v958_v42, %v1576_v0  ;;  %v1408_v0 = vld [vmem:[%s1751_s10 + $0x8] sm:$0xff]  ;;  %v1417_v42 = vld [vmem:[%s1757_s16] sm:$0xff] }
 0x5c9   : > { %1029 = vmatpush.bf16.msrb.mxu0 %v1408_v0 }
 0x5ca   : > { %v1660_v45 = vadd.f32 %v1430_v43, %v961_v44 }
 0x5cb   : > { %1192 = vmatpush.bf16.msrb.mxu2 %v1417_v42 }
 0x5cc   : > { %v969_v46 = vsel %vm575_vm0, %v1660_v45, 0.0 }
 0x5cd   : > { %970 = vadd.xlane.f32.xlu0 %v969_v46  ;;  %v937_v47 = vpop.f32.mrf.mxu2  ;;  %1030 = vmatpush.bf16.msrb.mxu0 %v1407_v53 }
 0x640   : > { %v971_v48 = vpop.xlane.xlu0 %970 }
 0x641   : > { %v972_v49 = vmul.f32 %v971_v48, %v1580_v8 }
 0x643   : > { %v973_v50 = vsub.f32 %v1660_v45, %v972_v49 }
 0x645   : > { %v974_v51 = vmul.f32 %v973_v50, %v973_v50 }
 0x647   : > { %v975_v52 = vsel %vm575_vm0, %v974_v51, 0.0 }
 0x648   : > { %976 = vadd.xlane.f32.xlu1 %v975_v52  ;;  %v1435_v52 = vld [vmem:[%s1755_s14] ss:$0 sm:$0xff] }
 0x6bb   : > { %v977_v55 = vpop.xlane.xlu1 %976 }
 0x6bc   : > { %v978_v56 = vmul.f32 %v977_v55, %v1580_v8 }
 0x6be   : > { %v979_v58 = vadd.f32 1e-05, %v978_v56 }
 0x6c0   : > { %1450 = vrsqrt.f32 %v979_v58  ;;  %vm986_vm10 = vweird.f32 %v979_v58 }
 0x6c6   : > { %v1451_v59 = vpop.eup %1450 }
 0x6c7   : > { %v981_v60 = vmul.f32 %v1451_v59, %v979_v58  ;;  %vm987_vm9 = vweird.f32 %v1451_v59 }
 0x6c8   : > { %vm988_vm11 = vmor %vm986_vm10, %vm987_vm9 }
 0x6c9   : > { %v982_v61 = vmul.f32 %v1451_v59, %v981_v60 }
 0x6cb   : > { %v983_v62 = vmul.f32 0.5, %v982_v61 }
 0x6cd   : > { %v984_v63 = vsub.f32 1.5, %v983_v62 }
 0x6cf   : > { %v985_v1 = vmul.f32 %v1451_v59, %v984_v63 }
 0x6d1   : > { %v989_v3 = vsel %vm988_vm11, %v1451_v59, %v985_v1 }
 0x6d2   : > { %v990_v4 = vmul.f32 %v989_v3, %v973_v50 }
 0x6d4   : > { %v994_v6 = vmul.f32 %v1431_v2, %v990_v4 }
 0x6d6   : > { %v998_v7 = vadd.f32 %v1432_v5, %v994_v6 }
 0x6d8   : > { %v999_v9 = vpack.c.bf16 %v998_v7, %v998_v7 }
 0x6da   : > { %1349 = vmatmul.msk.bf16.vlgmr.msrb.gmra.mxu0 %vm575_vm0, %v999_v9 }
 0x757   : > { %v1032_v17 = vpop.f32.mrf.mxu0 }
 0x758   : > { %v1033_v18 = vadd.f32 %v1433_v16, %v1032_v17 }
 0x75a   : > { %v1037_v19 = vmul.f32 0.044715, %v1033_v18  ;;  %v1036_v26 = vmul.f32 0.5, %v1033_v18 }
 0x75c   : > { %v1038_v20 = vmul.f32 %v1037_v19, %v1033_v18 }
 0x75e   : > { %v1039_v21 = vmul.f32 %v1038_v20, %v1033_v18 }
 0x75f   : > { %v1034_v22 = vpop.f32.mrf.mxu0 }
 0x760   : > { %v1040_v23 = vadd.f32 %v1039_v21, %v1033_v18 }
 0x762   : > { %v1041_v24 = vmul.f32 0.7978846, %v1040_v23 }
 0x764   : > { %1452 = vtanh.f32 %v1041_v24 }
 0x76a   : > { %v1453_v25 = vpop.eup %1452 }
 0x76b   : > { %v1043_v27 = vadd.f32 1.0, %v1453_v25 }
 0x76d   : > { %v1044_v28 = vmul.f32 %v1043_v27, %v1036_v26 }
 0x76f   : > { %v1045_v29 = vpack.c.bf16 %v1044_v28, %v1044_v28 }
 0x771   : > { %1118 = vmatmul.bf16.vlgmr.msra.gmra.mxu1 %v1045_v29 }
 0x7ee   : > { %v1119_v31 = vpop.f32.mrf.mxu1 }
 0x7ef   : > { %v1123_v32 = vadd.f32 %v1119_v31, %v1660_v45 }
 0x7f1   : > { %v1128_v33 = vadd.f32 %v1434_v30, %v1123_v32 }
 0x7f3   : > { %v1131_v34 = vsel %vm575_vm0, %v1128_v33, 0.0 }
 0x7f4   : > { %1132 = vadd.xlane.f32.xlu2 %v1131_v34 }
 0x7f6   : > { %v1121_v35 = vpop.f32.mrf.mxu1 }
 0x867   : > { %v1133_v36 = vpop.xlane.xlu2 %1132 }
 0x868   : > { %v1134_v37 = vmul.f32 %v1133_v36, %v1580_v8 }
 0x86a   : > { %v1135_v38 = vsub.f32 %v1128_v33, %v1134_v37 }
 0x86c   : > { %v1136_v39 = vmul.f32 %v1135_v38, %v1135_v38 }
 0x86e   : > { %v1137_v40 = vsel %vm575_vm0, %v1136_v39, 0.0 }
 0x86f   : > { %1138 = vadd.xlane.f32.xlu0 %v1137_v40 }
 0x8e2   : > { %v1139_v43 = vpop.xlane.xlu0 %1138 }
 0x8e3   : > { %v1140_v44 = vmul.f32 %v1139_v43, %v1580_v8  ;;  %v1436_v8 = vld [vmem:[%s1756_s15] ss:$0 sm:$0xff] }
 0x8e5   : > { %v1141_v45 = vadd.f32 1e-05, %v1140_v44 }
 0x8e7   : > { %1454 = vrsqrt.f32 %v1141_v45  ;;  %vm1148_vm13 = vweird.f32 %v1141_v45 }
 0x8ed   : > { %v1455_v46 = vpop.eup %1454 }
 0x8ee   : > { %v1143_v47 = vmul.f32 %v1455_v46, %v1141_v45  ;;  %vm1149_vm12 = vweird.f32 %v1455_v46 }
 0x8ef   : > { %vm1150_vm14 = vmor %vm1148_vm13, %vm1149_vm12 }
 0x8f0   : > { %v1144_v48 = vmul.f32 %v1455_v46, %v1143_v47 }
 0x8f2   : > { %v1145_v49 = vmul.f32 0.5, %v1144_v48 }
 0x8f4   : > { %v1146_v50 = vsub.f32 1.5, %v1145_v49 }
 0x8f6   : > { %v1147_v51 = vmul.f32 %v1455_v46, %v1146_v50 }
 0x8f8   : > { %v1151_v0 = vsel %vm1150_vm14, %v1455_v46, %v1147_v51 }
 0x8f9   : > { %v1152_v53 = vmul.f32 %v1151_v0, %v1135_v38 }
 0x8fb   : > { %v1156_v54 = vmul.f32 %v1435_v52, %v1152_v53 }
 0x8fd   : > { %v1160_v55 = vadd.f32 %v1436_v8, %v1156_v54 }
 0x8ff   : > { %v1161_v56 = vpack.c.bf16 %v1160_v55, %v1160_v55 }
 0x901   : > { %1390 = vmatmul.msk.bf16.vlgmr.msrb.gmra.mxu2 %vm575_vm0, %v1161_v56 }
 0x984   : > { %v1194_v58 = vpop.f32.mrf.mxu2 }
 0x985   : > { %v1195_v59 = vadd.f32 %v1437_v57, %v1194_v58 }
 0x987   : > { %1198 = vst.msk [vmem:[%s570_s23] sm:$0xff] %vm711_vm5, %v1195_v59 }
 0x98c   : > { %v1196_v60 = vpop.f32.mrf.mxu2 }
 0x98d PF: > { %s28_s27 = sadd.s32 1, %s1462_s27  }
 0x98e   : > { %p25_p4 = scmp.ge.s32.totalorder %s28_s27, 4  }
 0x990   :  { %27 = sbr.rel (!%p25_p4) target bundleno = 4 (0x4), region = 126 }

</bundles_post_ra>
